<compile_context>
chip_gen: v7x
topology: tpu7x:2x2x1
jax: 0.10.0
libtpu: 0.0.40
codegen_flags: <defaults>
</compile_context>

<pallas_src>
import functools

import numpy as np
import jax
import jax.numpy as jnp
from jax import lax
from jax.experimental import pallas as pl
from jax.experimental.pallas import tpu as pltpu

_PI = float(np.pi)
_BUF = 1e-6


def _atan(x):
    # TODO(synk): Mosaic has no native arctan lowering; this is a Cephes-style
    # float32 polynomial arctangent (~1e-7 abs err), used in place of torch.atan.
    ax = jnp.abs(x)
    big = ax > 2.414213562373095
    mid = ax > 0.4142135623730951
    xr = jnp.where(
        big,
        -1.0 / jnp.where(big, ax, 1.0),
        jnp.where(mid, (ax - 1.0) / (ax + 1.0), ax),
    )
    off = jnp.where(big, _PI / 2.0, jnp.where(mid, _PI / 4.0, 0.0))
    z = xr * xr
    p = ((8.05374449538e-2 * z - 1.38776856032e-1) * z
         + 1.99777106478e-1) * z - 3.33329491539e-1
    r = off + p * z * xr + xr
    return jnp.where(x < 0, -r, r)


def _sigmoid(x):
    # numerically stable sigmoid (matches torch.sigmoid semantics)
    e = jnp.exp(-jnp.abs(x))
    return jnp.where(x >= 0, 1.0 / (1.0 + e), e / (1.0 + e))


def _recip(x):
    # Exact reciprocal (approx=True would hit the EUP vrcp but perturbs
    # results; kept exact for parity with the PyTorch reference).
    return pl.reciprocal(x, approx=False)


# ---- zero-filled 1-pixel shifts (conv2d padding=1 halo handled in-kernel) ---
def _shift_m1_lane(x):  # out[..., j] = x[..., j-1], 0 at j == 0
    z = jnp.zeros_like(x[:, :, :1])
    return jnp.concatenate([z, x[:, :, :-1]], axis=2)


def _shift_p1_lane(x):  # out[..., j] = x[..., j+1], 0 at j == W-1
    z = jnp.zeros_like(x[:, :, :1])
    return jnp.concatenate([x[:, :, 1:], z], axis=2)


def _shift_m1_sub(x):   # out[:, i, :] = x[:, i-1, :], 0 at i == 0
    z = jnp.zeros_like(x[:, :1, :])
    return jnp.concatenate([z, x[:, :-1, :]], axis=1)


def _shift_p1_sub(x):   # out[:, i, :] = x[:, i+1, :], 0 at i == H-1
    z = jnp.zeros_like(x[:, :1, :])
    return jnp.concatenate([x[:, 1:, :], z], axis=1)


def _sobel(p):
    """3x3 Sobel (F.conv2d semantics, zero padding=1) on (nb, H, W).

    Only two lane-axis shifts per image; the rest are cheaper sublane shifts:
      d = p[:, :, j+1] - p[:, :, j-1]   (horizontal difference)
      s = p[:, :, j-1] + 2p + p[:, :, j+1]  (horizontal smoothing)
      gx = d[i-1] + 2 d[i] + d[i+1]
      gy = s[i+1] - s[i-1]
    """
    l = _shift_m1_lane(p)
    r = _shift_p1_lane(p)
    d = r - l
    s = l + 2.0 * p + r
    gx = _shift_m1_sub(d) + 2.0 * d + _shift_p1_sub(d)
    gy = _shift_p1_sub(s) - _shift_m1_sub(s)
    return gx, gy


def _grad_mag(gx, gy):
    """Gradient magnitude via rsqrt; returns (G_raw, G_eps, 1/G_eps).

    Mirrors the reference: G = sqrt(gx^2+gy^2); where G == 0, G += 1e-6.
    """
    s = gx * gx + gy * gy
    nz = s > 0.0
    r = lax.rsqrt(jnp.where(nz, s, 1.0))
    g = s * r                                   # == sqrt(s) for s > 0
    g_raw = jnp.where(nz, g, 0.0)
    g_eps = jnp.where(nz, g, _BUF)
    inv_g = jnp.where(nz, r, 1.0 / _BUF)
    return g_raw, g_eps, inv_g


def _ga_loss_kernel(img1_ref, img2_ref, mask_ref, gt_ref, qg_ref, dice_ref, *, k):
    p1 = img1_ref[...]
    p2 = img2_ref[...]
    pm = mask_ref[...]
    gt = gt_ref[...]

    # fused = mask * img1 + (1 - mask) * img2
    pf = pm * p1 + (1.0 - pm) * p2

    # --- Sobel gradients -----------------------------------------------------
    fuseX, fuseY = _sobel(pf)
    fuseX = fuseX + _BUF                       # unconditional +buf (reference)
    fuseG_raw, fuseG, inv_fuseG = _grad_mag(fuseX, fuseY)
    fuseX = fuseX + jnp.where(fuseX == 0.0, _BUF, 0.0)
    fuseA = _atan(fuseY * _recip(fuseX))

    img1X, img1Y = _sobel(p1)
    _, img1G, inv_img1G = _grad_mag(img1X, img1Y)
    img1X = img1X + jnp.where(img1X == 0.0, _BUF, 0.0)
    img1A = _atan(img1Y * _recip(img1X))

    img2X, img2Y = _sobel(p2)
    _, img2G, inv_img2G = _grad_mag(img2X, img2Y)
    img2X = img2X + jnp.where(img2X == 0.0, _BUF, 0.0)
    img2A = _atan(img2Y * _recip(img2X))

    # --- Q(A,F) ---------------------------------------------------------------
    buffer1 = fuseG_raw * inv_img1G            # fuseG (pre-eps) / img1G(eps)
    buffer2 = img1G * inv_fuseG                # img1G(eps) / fuseG(eps)
    bimap = _sigmoid(-k * (img1G - fuseG))
    Gaf = bimap * buffer2 + (1.0 - bimap) * buffer1
    Aaf = jnp.abs(jnp.abs(img1A - fuseA) - _PI / 2.0) * (2.0 / _PI)

    # --- Q(B,F) --- (the reference's second eps-on-fuseG is a no-op; dropped)
    buffer1 = fuseG * inv_img2G
    buffer2 = img2G * inv_fuseG
    bimap = _sigmoid(-k * (img2G - fuseG))
    Gbf = bimap * buffer2 + (1.0 - bimap) * buffer1
    Abf = jnp.abs(jnp.abs(img2A - fuseA) - _PI / 2.0) * (2.0 / _PI)

    k1, k2 = -10.0, -20.0
    delta1, delta2 = 0.5, 0.75
    Qaf = (_recip(1.0 + jnp.exp(k1 * (Gaf - delta1)))
           * _recip(1.0 + jnp.exp(k2 * (Aaf - delta2))))
    Qbf = (_recip(1.0 + jnp.exp(k1 * (Gbf - delta1)))
           * _recip(1.0 + jnp.exp(k2 * (Abf - delta2))))

    Wa = img1G                                  # pow(img1G, L=1)
    Wb = img2G
    qg_sum = jnp.sum((Qaf * Wa + Qbf * Wb) * _recip(Wa + Wb))

    # --- dice (MSE) partial sum ------------------------------------------------
    diff = pm - gt
    dice_sum = jnp.sum(diff * diff)

    # lane-padded per-block partials; wrapper reads [:, 0, 0] and reduces.
    qg_ref[...] = jnp.broadcast_to(qg_sum, qg_ref.shape)
    dice_ref[...] = jnp.broadcast_to(dice_sum, dice_ref.shape)


def _pick_batch_block(N, H, W):
    """Largest per-step batch block whose working set fits comfortably in VMEM.

    ~28 full-tile f32 arrays live at peak (4 double-buffered inputs + temps);
    keep the estimate under ~24 MiB so it fits v7x's 64 MiB physical / 32 MiB
    scoped VMEM with headroom (v5e/v6e have 128 MiB and are never the binder).
    """
    live_arrays = 28
    budget = 24 * 1024 * 1024
    per_img = H * W * 4 * live_arrays
    nb = max(1, min(N, budget // max(per_img, 1)))
    if N >= 2:
        # Keep at least 2 grid steps: enables DMA/compute pipelining and lets
        # the "parallel" batch axis shard across both TensorCores on v7x.
        nb = min(nb, max(1, N // 2))
    while N % nb:
        nb -= 1
    return nb


def ga_loss(img1, img2, mask, gt_mask, k=100000.0):
    """Returns (loss_dice + loss_qg, loss_dice), matching GALoss.forward."""
    N, C, H, W = img1.shape
    assert C == 1, "GALoss Sobel filters imply single-channel inputs"
    # TODO(synk): for tiny W (< 128) the vreg lane axis is mostly idle; keep
    # production W a multiple of 128 (or repack batch along lanes) for full VPU use.

    def prep(x):  # no HBM-side padding — halo is handled inside the kernel
        return x.reshape(N, H, W).astype(jnp.float32)

    img1_r, img2_r, mask_r, gt_r = prep(img1), prep(img2), prep(mask), prep(gt_mask)

    nb = _pick_batch_block(N, H, W)
    num_blocks = N // nb

    img_spec = pl.BlockSpec((nb, H, W), lambda b: (b, 0, 0))
    part_spec = pl.BlockSpec((1, 8, 128), lambda b: (b, 0, 0))
    part_shape = jax.ShapeDtypeStruct((num_blocks, 8, 128), jnp.float32)

    kern = functools.partial(_ga_loss_kernel, k=float(k))

    qg_parts, dice_parts = pl.pallas_call(
        kern,
        grid=(num_blocks,),
        in_specs=[img_spec, img_spec, img_spec, img_spec],
        out_specs=(part_spec, part_spec),
        out_shape=(part_shape, part_shape),
        compiler_params=pltpu.CompilerParams(
            dimension_semantics=("parallel",),
            vmem_limit_bytes=48 * 1024 * 1024,
        ),
    )(img1_r, img2_r, mask_r, gt_r)

    denom = jnp.float32(N * H * W)
    loss_qg = 1.0 - jnp.sum(qg_parts[:, 0, 0]) / denom
    loss_dice = jnp.sum(dice_parts[:, 0, 0]) / denom
    return loss_dice + loss_qg, loss_dice


if __name__ == "__main__":
    key = jax.random.PRNGKey(0)
    N, C, H, W = 2, 1, 16, 16
    k1, k2, k3, k4 = jax.random.split(key, 4)
    img1 = jax.random.uniform(k1, (N, C, H, W), dtype=jnp.float32)
    img2 = jax.random.uniform(k2, (N, C, H, W), dtype=jnp.float32)
    mask = jax.random.uniform(k3, (N, C, H, W), dtype=jnp.float32)
    gt_mask = (jax.random.uniform(k4, (N, C, H, W)) > 0.5).astype(jnp.float32)

    total_loss, dice_loss = ga_loss(img1, img2, mask, gt_mask, k=100000.0)
    jax.block_until_ready((total_loss, dice_loss))
    print("KERNEL_OK")
</pallas_src>

<mosaic_0001>
module attributes {stable_mosaic.version = 11 : i64} {
  func.func @_ga_loss_kernel(%arg0: i32, %arg1: memref<1x16x16xf32, #tpu.memory_space<vmem>>, %arg2: memref<1x16x16xf32, #tpu.memory_space<vmem>>, %arg3: memref<1x16x16xf32, #tpu.memory_space<vmem>>, %arg4: memref<1x16x16xf32, #tpu.memory_space<vmem>>, %arg5: memref<1x8x128xf32, #tpu.memory_space<vmem>>, %arg6: memref<1x8x128xf32, #tpu.memory_space<vmem>>) attributes {dimension_semantics = [#tpu.dimension_semantics<parallel>], iteration_bounds = array<i64: 2>, scalar_prefetch = 0 : i64, scratch_operands = 0 : i64, tpu.core_type = #tpu.core_type<tc>, window_params = [{transform_indices = @transform_0, window_bounds = array<i64: 1, 16, 16>}, {transform_indices = @transform_1, window_bounds = array<i64: 1, 16, 16>}, {transform_indices = @transform_2, window_bounds = array<i64: 1, 16, 16>}, {transform_indices = @transform_3, window_bounds = array<i64: 1, 16, 16>}, {transform_indices = @transform_4, window_bounds = array<i64: 1, 8, 128>}, {transform_indices = @transform_5, window_bounds = array<i64: 1, 8, 128>}]} {
    %c0 = arith.constant 0 : index
    %c0_0 = arith.constant 0 : index
    %c0_1 = arith.constant 0 : index
    %0 = vector.load %arg1[%c0, %c0_0, %c0_1] : memref<1x16x16xf32, #tpu.memory_space<vmem>>, vector<1x16x16xf32>
    %c0_2 = arith.constant 0 : index
    %c0_3 = arith.constant 0 : index
    %c0_4 = arith.constant 0 : index
    %1 = vector.load %arg2[%c0_2, %c0_3, %c0_4] : memref<1x16x16xf32, #tpu.memory_space<vmem>>, vector<1x16x16xf32>
    %c0_5 = arith.constant 0 : index
    %c0_6 = arith.constant 0 : index
    %c0_7 = arith.constant 0 : index
    %2 = vector.load %arg3[%c0_5, %c0_6, %c0_7] : memref<1x16x16xf32, #tpu.memory_space<vmem>>, vector<1x16x16xf32>
    %c0_8 = arith.constant 0 : index
    %c0_9 = arith.constant 0 : index
    %c0_10 = arith.constant 0 : index
    %3 = vector.load %arg4[%c0_8, %c0_9, %c0_10] : memref<1x16x16xf32, #tpu.memory_space<vmem>>, vector<1x16x16xf32>
    %4 = arith.mulf %2, %0 : vector<1x16x16xf32>
    %cst = arith.constant 1.000000e+00 : f32
    %5 = vector.broadcast %cst : f32 to vector<1x16x16xf32>
    %6 = arith.subf %5, %2 : vector<1x16x16xf32>
    %7 = arith.mulf %6, %1 : vector<1x16x16xf32>
    %8 = arith.addf %4, %7 : vector<1x16x16xf32>
    %cst_11 = arith.constant 0.000000e+00 : f32
    %9 = vector.broadcast %cst_11 : f32 to vector<1x16x1xf32>
    %10 = vector.extract_strided_slice %8 {offsets = [0, 0, 0], sizes = [1, 16, 15], strides = [1, 1, 1]} : vector<1x16x16xf32> to vector<1x16x15xf32>
    %11 = tpu.concatenate %9, %10 in 2 : vector<1x16x1xf32>, vector<1x16x15xf32> -> vector<1x16x16xf32>
    %cst_12 = arith.constant 0.000000e+00 : f32
    %12 = vector.broadcast %cst_12 : f32 to vector<1x16x1xf32>
    %13 = vector.extract_strided_slice %8 {offsets = [0, 0, 1], sizes = [1, 16, 15], strides = [1, 1, 1]} : vector<1x16x16xf32> to vector<1x16x15xf32>
    %14 = tpu.concatenate %13, %12 in 2 : vector<1x16x15xf32>, vector<1x16x1xf32> -> vector<1x16x16xf32>
    %15 = arith.subf %14, %11 : vector<1x16x16xf32>
    %cst_13 = arith.constant 2.000000e+00 : f32
    %16 = vector.broadcast %cst_13 : f32 to vector<1x16x16xf32>
    %17 = arith.mulf %16, %8 : vector<1x16x16xf32>
    %18 = arith.addf %11, %17 : vector<1x16x16xf32>
    %19 = arith.addf %18, %14 : vector<1x16x16xf32>
    %cst_14 = arith.constant 0.000000e+00 : f32
    %20 = vector.broadcast %cst_14 : f32 to vector<1x1x16xf32>
    %21 = vector.extract_strided_slice %15 {offsets = [0, 0, 0], sizes = [1, 15, 16], strides = [1, 1, 1]} : vector<1x16x16xf32> to vector<1x15x16xf32>
    %22 = tpu.concatenate %20, %21 in 1 : vector<1x1x16xf32>, vector<1x15x16xf32> -> vector<1x16x16xf32>
    %cst_15 = arith.constant 2.000000e+00 : f32
    %23 = vector.broadcast %cst_15 : f32 to vector<1x16x16xf32>
    %24 = arith.mulf %23, %15 : vector<1x16x16xf32>
    %25 = arith.addf %22, %24 : vector<1x16x16xf32>
    %cst_16 = arith.constant 0.000000e+00 : f32
    %26 = vector.broadcast %cst_16 : f32 to vector<1x1x16xf32>
    %27 = vector.extract_strided_slice %15 {offsets = [0, 1, 0], sizes = [1, 15, 16], strides = [1, 1, 1]} : vector<1x16x16xf32> to vector<1x15x16xf32>
    %28 = tpu.concatenate %27, %26 in 1 : vector<1x15x16xf32>, vector<1x1x16xf32> -> vector<1x16x16xf32>
    %29 = arith.addf %25, %28 : vector<1x16x16xf32>
    %cst_17 = arith.constant 0.000000e+00 : f32
    %30 = vector.broadcast %cst_17 : f32 to vector<1x1x16xf32>
    %31 = vector.extract_strided_slice %19 {offsets = [0, 1, 0], sizes = [1, 15, 16], strides = [1, 1, 1]} : vector<1x16x16xf32> to vector<1x15x16xf32>
    %32 = tpu.concatenate %31, %30 in 1 : vector<1x15x16xf32>, vector<1x1x16xf32> -> vector<1x16x16xf32>
    %cst_18 = arith.constant 0.000000e+00 : f32
    %33 = vector.broadcast %cst_18 : f32 to vector<1x1x16xf32>
    %34 = vector.extract_strided_slice %19 {offsets = [0, 0, 0], sizes = [1, 15, 16], strides = [1, 1, 1]} : vector<1x16x16xf32> to vector<1x15x16xf32>
    %35 = tpu.concatenate %33, %34 in 1 : vector<1x1x16xf32>, vector<1x15x16xf32> -> vector<1x16x16xf32>
    %36 = arith.subf %32, %35 : vector<1x16x16xf32>
    %cst_19 = arith.constant 9.99999997E-7 : f32
    %37 = vector.broadcast %cst_19 : f32 to vector<1x16x16xf32>
    %38 = arith.addf %29, %37 : vector<1x16x16xf32>
    %39 = arith.mulf %38, %38 : vector<1x16x16xf32>
    %40 = arith.mulf %36, %36 : vector<1x16x16xf32>
    %41 = arith.addf %39, %40 : vector<1x16x16xf32>
    %cst_20 = arith.constant 0.000000e+00 : f32
    %42 = vector.broadcast %cst_20 : f32 to vector<1x16x16xf32>
    %43 = arith.cmpf ogt, %41, %42 : vector<1x16x16xf32>
    %cst_21 = arith.constant 1.000000e+00 : f32
    %44 = vector.broadcast %cst_21 : f32 to vector<1x16x16xf32>
    %45 = arith.select %43, %41, %44 : vector<1x16x16xi1>, vector<1x16x16xf32>
    %46 = math.rsqrt %45 : vector<1x16x16xf32>
    %47 = arith.mulf %41, %46 : vector<1x16x16xf32>
    %cst_22 = arith.constant 0.000000e+00 : f32
    %48 = vector.broadcast %cst_22 : f32 to vector<1x16x16xf32>
    %49 = arith.select %43, %47, %48 : vector<1x16x16xi1>, vector<1x16x16xf32>
    %cst_23 = arith.constant 9.99999997E-7 : f32
    %50 = vector.broadcast %cst_23 : f32 to vector<1x16x16xf32>
    %51 = arith.select %43, %47, %50 : vector<1x16x16xi1>, vector<1x16x16xf32>
    %cst_24 = arith.constant 1.000000e+06 : f32
    %52 = vector.broadcast %cst_24 : f32 to vector<1x16x16xf32>
    %53 = arith.select %43, %46, %52 : vector<1x16x16xi1>, vector<1x16x16xf32>
    %cst_25 = arith.constant 0.000000e+00 : f32
    %54 = vector.broadcast %cst_25 : f32 to vector<1x16x16xf32>
    %55 = arith.cmpf oeq, %38, %54 : vector<1x16x16xf32>
    %cst_26 = arith.constant 9.99999997E-7 : f32
    %cst_27 = arith.constant 0.000000e+00 : f32
    %56 = vector.broadcast %cst_26 : f32 to vector<1x16x16xf32>
    %57 = vector.broadcast %cst_27 : f32 to vector<1x16x16xf32>
    %58 = arith.select %55, %56, %57 : vector<1x16x16xi1>, vector<1x16x16xf32>
    %59 = arith.addf %38, %58 : vector<1x16x16xf32>
    %60 = tpu.reciprocal %59 : vector<1x16x16xf32> -> vector<1x16x16xf32>
    %61 = arith.mulf %36, %60 : vector<1x16x16xf32>
    %62 = math.absf %61 : vector<1x16x16xf32>
    %cst_28 = arith.constant 2.41421366 : f32
    %63 = vector.broadcast %cst_28 : f32 to vector<1x16x16xf32>
    %64 = arith.cmpf ogt, %62, %63 : vector<1x16x16xf32>
    %cst_29 = arith.constant 0.414213568 : f32
    %65 = vector.broadcast %cst_29 : f32 to vector<1x16x16xf32>
    %66 = arith.cmpf ogt, %62, %65 : vector<1x16x16xf32>
    %cst_30 = arith.constant 1.000000e+00 : f32
    %67 = vector.broadcast %cst_30 : f32 to vector<1x16x16xf32>
    %68 = arith.select %64, %62, %67 : vector<1x16x16xi1>, vector<1x16x16xf32>
    %cst_31 = arith.constant -1.000000e+00 : f32
    %69 = vector.broadcast %cst_31 : f32 to vector<1x16x16xf32>
    %70 = arith.divf %69, %68 : vector<1x16x16xf32>
    %cst_32 = arith.constant 1.000000e+00 : f32
    %71 = vector.broadcast %cst_32 : f32 to vector<1x16x16xf32>
    %72 = arith.subf %62, %71 : vector<1x16x16xf32>
    %cst_33 = arith.constant 1.000000e+00 : f32
    %73 = vector.broadcast %cst_33 : f32 to vector<1x16x16xf32>
    %74 = arith.addf %62, %73 : vector<1x16x16xf32>
    %75 = arith.divf %72, %74 : vector<1x16x16xf32>
    %76 = arith.select %66, %75, %62 : vector<1x16x16xi1>, vector<1x16x16xf32>
    %77 = arith.select %64, %70, %76 : vector<1x16x16xi1>, vector<1x16x16xf32>
    %cst_34 = arith.constant 0.785398185 : f32
    %cst_35 = arith.constant 0.000000e+00 : f32
    %78 = vector.broadcast %cst_34 : f32 to vector<1x16x16xf32>
    %79 = vector.broadcast %cst_35 : f32 to vector<1x16x16xf32>
    %80 = arith.select %66, %78, %79 : vector<1x16x16xi1>, vector<1x16x16xf32>
    %cst_36 = arith.constant 1.57079637 : f32
    %81 = vector.broadcast %cst_36 : f32 to vector<1x16x16xf32>
    %82 = arith.select %64, %81, %80 : vector<1x16x16xi1>, vector<1x16x16xf32>
    %83 = arith.mulf %77, %77 : vector<1x16x16xf32>
    %cst_37 = arith.constant 0.0805374458 : f32
    %84 = vector.broadcast %cst_37 : f32 to vector<1x16x16xf32>
    %85 = arith.mulf %84, %83 : vector<1x16x16xf32>
    %cst_38 = arith.constant 0.138776854 : f32
    %86 = vector.broadcast %cst_38 : f32 to vector<1x16x16xf32>
    %87 = arith.subf %85, %86 : vector<1x16x16xf32>
    %88 = arith.mulf %87, %83 : vector<1x16x16xf32>
    %cst_39 = arith.constant 0.199777111 : f32
    %89 = vector.broadcast %cst_39 : f32 to vector<1x16x16xf32>
    %90 = arith.addf %88, %89 : vector<1x16x16xf32>
    %91 = arith.mulf %90, %83 : vector<1x16x16xf32>
    %cst_40 = arith.constant 0.333329499 : f32
    %92 = vector.broadcast %cst_40 : f32 to vector<1x16x16xf32>
    %93 = arith.subf %91, %92 : vector<1x16x16xf32>
    %94 = arith.mulf %93, %83 : vector<1x16x16xf32>
    %95 = arith.mulf %94, %77 : vector<1x16x16xf32>
    %96 = arith.addf %82, %95 : vector<1x16x16xf32>
    %97 = arith.addf %96, %77 : vector<1x16x16xf32>
    %cst_41 = arith.constant 0.000000e+00 : f32
    %98 = vector.broadcast %cst_41 : f32 to vector<1x16x16xf32>
    %99 = arith.cmpf olt, %61, %98 : vector<1x16x16xf32>
    %cst_42 = arith.constant 0.000000e+00 : f32
    %100 = vector.broadcast %cst_42 : f32 to vector<1x16x16xf32>
    %101 = arith.subf %100, %97 : vector<1x16x16xf32>
    %102 = arith.select %99, %101, %97 : vector<1x16x16xi1>, vector<1x16x16xf32>
    %cst_43 = arith.constant 0.000000e+00 : f32
    %103 = vector.broadcast %cst_43 : f32 to vector<1x16x1xf32>
    %104 = vector.extract_strided_slice %0 {offsets = [0, 0, 0], sizes = [1, 16, 15], strides = [1, 1, 1]} : vector<1x16x16xf32> to vector<1x16x15xf32>
    %105 = tpu.concatenate %103, %104 in 2 : vector<1x16x1xf32>, vector<1x16x15xf32> -> vector<1x16x16xf32>
    %cst_44 = arith.constant 0.000000e+00 : f32
    %106 = vector.broadcast %cst_44 : f32 to vector<1x16x1xf32>
    %107 = vector.extract_strided_slice %0 {offsets = [0, 0, 1], sizes = [1, 16, 15], strides = [1, 1, 1]} : vector<1x16x16xf32> to vector<1x16x15xf32>
    %108 = tpu.concatenate %107, %106 in 2 : vector<1x16x15xf32>, vector<1x16x1xf32> -> vector<1x16x16xf32>
    %109 = arith.subf %108, %105 : vector<1x16x16xf32>
    %cst_45 = arith.constant 2.000000e+00 : f32
    %110 = vector.broadcast %cst_45 : f32 to vector<1x16x16xf32>
    %111 = arith.mulf %110, %0 : vector<1x16x16xf32>
    %112 = arith.addf %105, %111 : vector<1x16x16xf32>
    %113 = arith.addf %112, %108 : vector<1x16x16xf32>
    %cst_46 = arith.constant 0.000000e+00 : f32
    %114 = vector.broadcast %cst_46 : f32 to vector<1x1x16xf32>
    %115 = vector.extract_strided_slice %109 {offsets = [0, 0, 0], sizes = [1, 15, 16], strides = [1, 1, 1]} : vector<1x16x16xf32> to vector<1x15x16xf32>
    %116 = tpu.concatenate %114, %115 in 1 : vector<1x1x16xf32>, vector<1x15x16xf32> -> vector<1x16x16xf32>
    %cst_47 = arith.constant 2.000000e+00 : f32
    %117 = vector.broadcast %cst_47 : f32 to vector<1x16x16xf32>
    %118 = arith.mulf %117, %109 : vector<1x16x16xf32>
    %119 = arith.addf %116, %118 : vector<1x16x16xf32>
    %cst_48 = arith.constant 0.000000e+00 : f32
    %120 = vector.broadcast %cst_48 : f32 to vector<1x1x16xf32>
    %121 = vector.extract_strided_slice %109 {offsets = [0, 1, 0], sizes = [1, 15, 16], strides = [1, 1, 1]} : vector<1x16x16xf32> to vector<1x15x16xf32>
    %122 = tpu.concatenate %121, %120 in 1 : vector<1x15x16xf32>, vector<1x1x16xf32> -> vector<1x16x16xf32>
    %123 = arith.addf %119, %122 : vector<1x16x16xf32>
    %cst_49 = arith.constant 0.000000e+00 : f32
    %124 = vector.broadcast %cst_49 : f32 to vector<1x1x16xf32>
    %125 = vector.extract_strided_slice %113 {offsets = [0, 1, 0], sizes = [1, 15, 16], strides = [1, 1, 1]} : vector<1x16x16xf32> to vector<1x15x16xf32>
    %126 = tpu.concatenate %125, %124 in 1 : vector<1x15x16xf32>, vector<1x1x16xf32> -> vector<1x16x16xf32>
    %cst_50 = arith.constant 0.000000e+00 : f32
    %127 = vector.broadcast %cst_50 : f32 to vector<1x1x16xf32>
    %128 = vector.extract_strided_slice %113 {offsets = [0, 0, 0], sizes = [1, 15, 16], strides = [1, 1, 1]} : vector<1x16x16xf32> to vector<1x15x16xf32>
    %129 = tpu.concatenate %127, %128 in 1 : vector<1x1x16xf32>, vector<1x15x16xf32> -> vector<1x16x16xf32>
    %130 = arith.subf %126, %129 : vector<1x16x16xf32>
    %131 = arith.mulf %123, %123 : vector<1x16x16xf32>
    %132 = arith.mulf %130, %130 : vector<1x16x16xf32>
    %133 = arith.addf %131, %132 : vector<1x16x16xf32>
    %cst_51 = arith.constant 0.000000e+00 : f32
    %134 = vector.broadcast %cst_51 : f32 to vector<1x16x16xf32>
    %135 = arith.cmpf ogt, %133, %134 : vector<1x16x16xf32>
    %cst_52 = arith.constant 1.000000e+00 : f32
    %136 = vector.broadcast %cst_52 : f32 to vector<1x16x16xf32>
    %137 = arith.select %135, %133, %136 : vector<1x16x16xi1>, vector<1x16x16xf32>
    %138 = math.rsqrt %137 : vector<1x16x16xf32>
    %139 = arith.mulf %133, %138 : vector<1x16x16xf32>
    %cst_53 = arith.constant 9.99999997E-7 : f32
    %140 = vector.broadcast %cst_53 : f32 to vector<1x16x16xf32>
    %141 = arith.select %135, %139, %140 : vector<1x16x16xi1>, vector<1x16x16xf32>
    %cst_54 = arith.constant 1.000000e+06 : f32
    %142 = vector.broadcast %cst_54 : f32 to vector<1x16x16xf32>
    %143 = arith.select %135, %138, %142 : vector<1x16x16xi1>, vector<1x16x16xf32>
    %cst_55 = arith.constant 0.000000e+00 : f32
    %144 = vector.broadcast %cst_55 : f32 to vector<1x16x16xf32>
    %145 = arith.cmpf oeq, %123, %144 : vector<1x16x16xf32>
    %cst_56 = arith.constant 9.99999997E-7 : f32
    %cst_57 = arith.constant 0.000000e+00 : f32
    %146 = vector.broadcast %cst_56 : f32 to vector<1x16x16xf32>
    %147 = vector.broadcast %cst_57 : f32 to vector<1x16x16xf32>
    %148 = arith.select %145, %146, %147 : vector<1x16x16xi1>, vector<1x16x16xf32>
    %149 = arith.addf %123, %148 : vector<1x16x16xf32>
    %150 = tpu.reciprocal %149 : vector<1x16x16xf32> -> vector<1x16x16xf32>
    %151 = arith.mulf %130, %150 : vector<1x16x16xf32>
    %152 = math.absf %151 : vector<1x16x16xf32>
    %cst_58 = arith.constant 2.41421366 : f32
    %153 = vector.broadcast %cst_58 : f32 to vector<1x16x16xf32>
    %154 = arith.cmpf ogt, %152, %153 : vector<1x16x16xf32>
    %cst_59 = arith.constant 0.414213568 : f32
    %155 = vector.broadcast %cst_59 : f32 to vector<1x16x16xf32>
    %156 = arith.cmpf ogt, %152, %155 : vector<1x16x16xf32>
    %cst_60 = arith.constant 1.000000e+00 : f32
    %157 = vector.broadcast %cst_60 : f32 to vector<1x16x16xf32>
    %158 = arith.select %154, %152, %157 : vector<1x16x16xi1>, vector<1x16x16xf32>
    %cst_61 = arith.constant -1.000000e+00 : f32
    %159 = vector.broadcast %cst_61 : f32 to vector<1x16x16xf32>
    %160 = arith.divf %159, %158 : vector<1x16x16xf32>
    %cst_62 = arith.constant 1.000000e+00 : f32
    %161 = vector.broadcast %cst_62 : f32 to vector<1x16x16xf32>
    %162 = arith.subf %152, %161 : vector<1x16x16xf32>
    %cst_63 = arith.constant 1.000000e+00 : f32
    %163 = vector.broadcast %cst_63 : f32 to vector<1x16x16xf32>
    %164 = arith.addf %152, %163 : vector<1x16x16xf32>
    %165 = arith.divf %162, %164 : vector<1x16x16xf32>
    %166 = arith.select %156, %165, %152 : vector<1x16x16xi1>, vector<1x16x16xf32>
    %167 = arith.select %154, %160, %166 : vector<1x16x16xi1>, vector<1x16x16xf32>
    %cst_64 = arith.constant 0.785398185 : f32
    %cst_65 = arith.constant 0.000000e+00 : f32
    %168 = vector.broadcast %cst_64 : f32 to vector<1x16x16xf32>
    %169 = vector.broadcast %cst_65 : f32 to vector<1x16x16xf32>
    %170 = arith.select %156, %168, %169 : vector<1x16x16xi1>, vector<1x16x16xf32>
    %cst_66 = arith.constant 1.57079637 : f32
    %171 = vector.broadcast %cst_66 : f32 to vector<1x16x16xf32>
    %172 = arith.select %154, %171, %170 : vector<1x16x16xi1>, vector<1x16x16xf32>
    %173 = arith.mulf %167, %167 : vector<1x16x16xf32>
    %cst_67 = arith.constant 0.0805374458 : f32
    %174 = vector.broadcast %cst_67 : f32 to vector<1x16x16xf32>
    %175 = arith.mulf %174, %173 : vector<1x16x16xf32>
    %cst_68 = arith.constant 0.138776854 : f32
    %176 = vector.broadcast %cst_68 : f32 to vector<1x16x16xf32>
    %177 = arith.subf %175, %176 : vector<1x16x16xf32>
    %178 = arith.mulf %177, %173 : vector<1x16x16xf32>
    %cst_69 = arith.constant 0.199777111 : f32
    %179 = vector.broadcast %cst_69 : f32 to vector<1x16x16xf32>
    %180 = arith.addf %178, %179 : vector<1x16x16xf32>
    %181 = arith.mulf %180, %173 : vector<1x16x16xf32>
    %cst_70 = arith.constant 0.333329499 : f32
    %182 = vector.broadcast %cst_70 : f32 to vector<1x16x16xf32>
    %183 = arith.subf %181, %182 : vector<1x16x16xf32>
    %184 = arith.mulf %183, %173 : vector<1x16x16xf32>
    %185 = arith.mulf %184, %167 : vector<1x16x16xf32>
    %186 = arith.addf %172, %185 : vector<1x16x16xf32>
    %187 = arith.addf %186, %167 : vector<1x16x16xf32>
    %cst_71 = arith.constant 0.000000e+00 : f32
    %188 = vector.broadcast %cst_71 : f32 to vector<1x16x16xf32>
    %189 = arith.cmpf olt, %151, %188 : vector<1x16x16xf32>
    %cst_72 = arith.constant 0.000000e+00 : f32
    %190 = vector.broadcast %cst_72 : f32 to vector<1x16x16xf32>
    %191 = arith.subf %190, %187 : vector<1x16x16xf32>
    %192 = arith.select %189, %191, %187 : vector<1x16x16xi1>, vector<1x16x16xf32>
    %cst_73 = arith.constant 0.000000e+00 : f32
    %193 = vector.broadcast %cst_73 : f32 to vector<1x16x1xf32>
    %194 = vector.extract_strided_slice %1 {offsets = [0, 0, 0], sizes = [1, 16, 15], strides = [1, 1, 1]} : vector<1x16x16xf32> to vector<1x16x15xf32>
    %195 = tpu.concatenate %193, %194 in 2 : vector<1x16x1xf32>, vector<1x16x15xf32> -> vector<1x16x16xf32>
    %cst_74 = arith.constant 0.000000e+00 : f32
    %196 = vector.broadcast %cst_74 : f32 to vector<1x16x1xf32>
    %197 = vector.extract_strided_slice %1 {offsets = [0, 0, 1], sizes = [1, 16, 15], strides = [1, 1, 1]} : vector<1x16x16xf32> to vector<1x16x15xf32>
    %198 = tpu.concatenate %197, %196 in 2 : vector<1x16x15xf32>, vector<1x16x1xf32> -> vector<1x16x16xf32>
    %199 = arith.subf %198, %195 : vector<1x16x16xf32>
    %cst_75 = arith.constant 2.000000e+00 : f32
    %200 = vector.broadcast %cst_75 : f32 to vector<1x16x16xf32>
    %201 = arith.mulf %200, %1 : vector<1x16x16xf32>
    %202 = arith.addf %195, %201 : vector<1x16x16xf32>
    %203 = arith.addf %202, %198 : vector<1x16x16xf32>
    %cst_76 = arith.constant 0.000000e+00 : f32
    %204 = vector.broadcast %cst_76 : f32 to vector<1x1x16xf32>
    %205 = vector.extract_strided_slice %199 {offsets = [0, 0, 0], sizes = [1, 15, 16], strides = [1, 1, 1]} : vector<1x16x16xf32> to vector<1x15x16xf32>
    %206 = tpu.concatenate %204, %205 in 1 : vector<1x1x16xf32>, vector<1x15x16xf32> -> vector<1x16x16xf32>
    %cst_77 = arith.constant 2.000000e+00 : f32
    %207 = vector.broadcast %cst_77 : f32 to vector<1x16x16xf32>
    %208 = arith.mulf %207, %199 : vector<1x16x16xf32>
    %209 = arith.addf %206, %208 : vector<1x16x16xf32>
    %cst_78 = arith.constant 0.000000e+00 : f32
    %210 = vector.broadcast %cst_78 : f32 to vector<1x1x16xf32>
    %211 = vector.extract_strided_slice %199 {offsets = [0, 1, 0], sizes = [1, 15, 16], strides = [1, 1, 1]} : vector<1x16x16xf32> to vector<1x15x16xf32>
    %212 = tpu.concatenate %211, %210 in 1 : vector<1x15x16xf32>, vector<1x1x16xf32> -> vector<1x16x16xf32>
    %213 = arith.addf %209, %212 : vector<1x16x16xf32>
    %cst_79 = arith.constant 0.000000e+00 : f32
    %214 = vector.broadcast %cst_79 : f32 to vector<1x1x16xf32>
    %215 = vector.extract_strided_slice %203 {offsets = [0, 1, 0], sizes = [1, 15, 16], strides = [1, 1, 1]} : vector<1x16x16xf32> to vector<1x15x16xf32>
    %216 = tpu.concatenate %215, %214 in 1 : vector<1x15x16xf32>, vector<1x1x16xf32> -> vector<1x16x16xf32>
    %cst_80 = arith.constant 0.000000e+00 : f32
    %217 = vector.broadcast %cst_80 : f32 to vector<1x1x16xf32>
    %218 = vector.extract_strided_slice %203 {offsets = [0, 0, 0], sizes = [1, 15, 16], strides = [1, 1, 1]} : vector<1x16x16xf32> to vector<1x15x16xf32>
    %219 = tpu.concatenate %217, %218 in 1 : vector<1x1x16xf32>, vector<1x15x16xf32> -> vector<1x16x16xf32>
    %220 = arith.subf %216, %219 : vector<1x16x16xf32>
    %221 = arith.mulf %213, %213 : vector<1x16x16xf32>
    %222 = arith.mulf %220, %220 : vector<1x16x16xf32>
    %223 = arith.addf %221, %222 : vector<1x16x16xf32>
    %cst_81 = arith.constant 0.000000e+00 : f32
    %224 = vector.broadcast %cst_81 : f32 to vector<1x16x16xf32>
    %225 = arith.cmpf ogt, %223, %224 : vector<1x16x16xf32>
    %cst_82 = arith.constant 1.000000e+00 : f32
    %226 = vector.broadcast %cst_82 : f32 to vector<1x16x16xf32>
    %227 = arith.select %225, %223, %226 : vector<1x16x16xi1>, vector<1x16x16xf32>
    %228 = math.rsqrt %227 : vector<1x16x16xf32>
    %229 = arith.mulf %223, %228 : vector<1x16x16xf32>
    %cst_83 = arith.constant 9.99999997E-7 : f32
    %230 = vector.broadcast %cst_83 : f32 to vector<1x16x16xf32>
    %231 = arith.select %225, %229, %230 : vector<1x16x16xi1>, vector<1x16x16xf32>
    %cst_84 = arith.constant 1.000000e+06 : f32
    %232 = vector.broadcast %cst_84 : f32 to vector<1x16x16xf32>
    %233 = arith.select %225, %228, %232 : vector<1x16x16xi1>, vector<1x16x16xf32>
    %cst_85 = arith.constant 0.000000e+00 : f32
    %234 = vector.broadcast %cst_85 : f32 to vector<1x16x16xf32>
    %235 = arith.cmpf oeq, %213, %234 : vector<1x16x16xf32>
    %cst_86 = arith.constant 9.99999997E-7 : f32
    %cst_87 = arith.constant 0.000000e+00 : f32
    %236 = vector.broadcast %cst_86 : f32 to vector<1x16x16xf32>
    %237 = vector.broadcast %cst_87 : f32 to vector<1x16x16xf32>
    %238 = arith.select %235, %236, %237 : vector<1x16x16xi1>, vector<1x16x16xf32>
    %239 = arith.addf %213, %238 : vector<1x16x16xf32>
    %240 = tpu.reciprocal %239 : vector<1x16x16xf32> -> vector<1x16x16xf32>
    %241 = arith.mulf %220, %240 : vector<1x16x16xf32>
    %242 = math.absf %241 : vector<1x16x16xf32>
    %cst_88 = arith.constant 2.41421366 : f32
    %243 = vector.broadcast %cst_88 : f32 to vector<1x16x16xf32>
    %244 = arith.cmpf ogt, %242, %243 : vector<1x16x16xf32>
    %cst_89 = arith.constant 0.414213568 : f32
    %245 = vector.broadcast %cst_89 : f32 to vector<1x16x16xf32>
    %246 = arith.cmpf ogt, %242, %245 : vector<1x16x16xf32>
    %cst_90 = arith.constant 1.000000e+00 : f32
    %247 = vector.broadcast %cst_90 : f32 to vector<1x16x16xf32>
    %248 = arith.select %244, %242, %247 : vector<1x16x16xi1>, vector<1x16x16xf32>
    %cst_91 = arith.constant -1.000000e+00 : f32
    %249 = vector.broadcast %cst_91 : f32 to vector<1x16x16xf32>
    %250 = arith.divf %249, %248 : vector<1x16x16xf32>
    %cst_92 = arith.constant 1.000000e+00 : f32
    %251 = vector.broadcast %cst_92 : f32 to vector<1x16x16xf32>
    %252 = arith.subf %242, %251 : vector<1x16x16xf32>
    %cst_93 = arith.constant 1.000000e+00 : f32
    %253 = vector.broadcast %cst_93 : f32 to vector<1x16x16xf32>
    %254 = arith.addf %242, %253 : vector<1x16x16xf32>
    %255 = arith.divf %252, %254 : vector<1x16x16xf32>
    %256 = arith.select %246, %255, %242 : vector<1x16x16xi1>, vector<1x16x16xf32>
    %257 = arith.select %244, %250, %256 : vector<1x16x16xi1>, vector<1x16x16xf32>
    %cst_94 = arith.constant 0.785398185 : f32
    %cst_95 = arith.constant 0.000000e+00 : f32
    %258 = vector.broadcast %cst_94 : f32 to vector<1x16x16xf32>
    %259 = vector.broadcast %cst_95 : f32 to vector<1x16x16xf32>
    %260 = arith.select %246, %258, %259 : vector<1x16x16xi1>, vector<1x16x16xf32>
    %cst_96 = arith.constant 1.57079637 : f32
    %261 = vector.broadcast %cst_96 : f32 to vector<1x16x16xf32>
    %262 = arith.select %244, %261, %260 : vector<1x16x16xi1>, vector<1x16x16xf32>
    %263 = arith.mulf %257, %257 : vector<1x16x16xf32>
    %cst_97 = arith.constant 0.0805374458 : f32
    %264 = vector.broadcast %cst_97 : f32 to vector<1x16x16xf32>
    %265 = arith.mulf %264, %263 : vector<1x16x16xf32>
    %cst_98 = arith.constant 0.138776854 : f32
    %266 = vector.broadcast %cst_98 : f32 to vector<1x16x16xf32>
    %267 = arith.subf %265, %266 : vector<1x16x16xf32>
    %268 = arith.mulf %267, %263 : vector<1x16x16xf32>
    %cst_99 = arith.constant 0.199777111 : f32
    %269 = vector.broadcast %cst_99 : f32 to vector<1x16x16xf32>
    %270 = arith.addf %268, %269 : vector<1x16x16xf32>
    %271 = arith.mulf %270, %263 : vector<1x16x16xf32>
    %cst_100 = arith.constant 0.333329499 : f32
    %272 = vector.broadcast %cst_100 : f32 to vector<1x16x16xf32>
    %273 = arith.subf %271, %272 : vector<1x16x16xf32>
    %274 = arith.mulf %273, %263 : vector<1x16x16xf32>
    %275 = arith.mulf %274, %257 : vector<1x16x16xf32>
    %276 = arith.addf %262, %275 : vector<1x16x16xf32>
    %277 = arith.addf %276, %257 : vector<1x16x16xf32>
    %cst_101 = arith.constant 0.000000e+00 : f32
    %278 = vector.broadcast %cst_101 : f32 to vector<1x16x16xf32>
    %279 = arith.cmpf olt, %241, %278 : vector<1x16x16xf32>
    %cst_102 = arith.constant 0.000000e+00 : f32
    %280 = vector.broadcast %cst_102 : f32 to vector<1x16x16xf32>
    %281 = arith.subf %280, %277 : vector<1x16x16xf32>
    %282 = arith.select %279, %281, %277 : vector<1x16x16xi1>, vector<1x16x16xf32>
    %283 = arith.mulf %49, %143 : vector<1x16x16xf32>
    %284 = arith.mulf %141, %53 : vector<1x16x16xf32>
    %285 = arith.subf %141, %51 : vector<1x16x16xf32>
    %cst_103 = arith.constant -1.000000e+05 : f32
    %286 = vector.broadcast %cst_103 : f32 to vector<1x16x16xf32>
    %287 = arith.mulf %286, %285 : vector<1x16x16xf32>
    %288 = math.absf %287 : vector<1x16x16xf32>
    %cst_104 = arith.constant 0.000000e+00 : f32
    %289 = vector.broadcast %cst_104 : f32 to vector<1x16x16xf32>
    %290 = arith.subf %289, %288 : vector<1x16x16xf32>
    %291 = math.exp %290 : vector<1x16x16xf32>
    %cst_105 = arith.constant 0.000000e+00 : f32
    %292 = vector.broadcast %cst_105 : f32 to vector<1x16x16xf32>
    %293 = arith.cmpf oge, %287, %292 : vector<1x16x16xf32>
    %cst_106 = arith.constant 1.000000e+00 : f32
    %294 = vector.broadcast %cst_106 : f32 to vector<1x16x16xf32>
    %295 = arith.addf %294, %291 : vector<1x16x16xf32>
    %cst_107 = arith.constant 1.000000e+00 : f32
    %296 = vector.broadcast %cst_107 : f32 to vector<1x16x16xf32>
    %297 = arith.divf %296, %295 : vector<1x16x16xf32>
    %cst_108 = arith.constant 1.000000e+00 : f32
    %298 = vector.broadcast %cst_108 : f32 to vector<1x16x16xf32>
    %299 = arith.addf %298, %291 : vector<1x16x16xf32>
    %300 = arith.divf %291, %299 : vector<1x16x16xf32>
    %301 = arith.select %293, %297, %300 : vector<1x16x16xi1>, vector<1x16x16xf32>
    %302 = arith.mulf %301, %284 : vector<1x16x16xf32>
    %cst_109 = arith.constant 1.000000e+00 : f32
    %303 = vector.broadcast %cst_109 : f32 to vector<1x16x16xf32>
    %304 = arith.subf %303, %301 : vector<1x16x16xf32>
    %305 = arith.mulf %304, %283 : vector<1x16x16xf32>
    %306 = arith.addf %302, %305 : vector<1x16x16xf32>
    %307 = arith.subf %192, %102 : vector<1x16x16xf32>
    %308 = math.absf %307 : vector<1x16x16xf32>
    %cst_110 = arith.constant 1.57079637 : f32
    %309 = vector.broadcast %cst_110 : f32 to vector<1x16x16xf32>
    %310 = arith.subf %308, %309 : vector<1x16x16xf32>
    %311 = math.absf %310 : vector<1x16x16xf32>
    %cst_111 = arith.constant 0.636619746 : f32
    %312 = vector.broadcast %cst_111 : f32 to vector<1x16x16xf32>
    %313 = arith.mulf %311, %312 : vector<1x16x16xf32>
    %314 = arith.mulf %51, %233 : vector<1x16x16xf32>
    %315 = arith.mulf %231, %53 : vector<1x16x16xf32>
    %316 = arith.subf %231, %51 : vector<1x16x16xf32>
    %cst_112 = arith.constant -1.000000e+05 : f32
    %317 = vector.broadcast %cst_112 : f32 to vector<1x16x16xf32>
    %318 = arith.mulf %317, %316 : vector<1x16x16xf32>
    %319 = math.absf %318 : vector<1x16x16xf32>
    %cst_113 = arith.constant 0.000000e+00 : f32
    %320 = vector.broadcast %cst_113 : f32 to vector<1x16x16xf32>
    %321 = arith.subf %320, %319 : vector<1x16x16xf32>
    %322 = math.exp %321 : vector<1x16x16xf32>
    %cst_114 = arith.constant 0.000000e+00 : f32
    %323 = vector.broadcast %cst_114 : f32 to vector<1x16x16xf32>
    %324 = arith.cmpf oge, %318, %323 : vector<1x16x16xf32>
    %cst_115 = arith.constant 1.000000e+00 : f32
    %325 = vector.broadcast %cst_115 : f32 to vector<1x16x16xf32>
    %326 = arith.addf %325, %322 : vector<1x16x16xf32>
    %cst_116 = arith.constant 1.000000e+00 : f32
    %327 = vector.broadcast %cst_116 : f32 to vector<1x16x16xf32>
    %328 = arith.divf %327, %326 : vector<1x16x16xf32>
    %cst_117 = arith.constant 1.000000e+00 : f32
    %329 = vector.broadcast %cst_117 : f32 to vector<1x16x16xf32>
    %330 = arith.addf %329, %322 : vector<1x16x16xf32>
    %331 = arith.divf %322, %330 : vector<1x16x16xf32>
    %332 = arith.select %324, %328, %331 : vector<1x16x16xi1>, vector<1x16x16xf32>
    %333 = arith.mulf %332, %315 : vector<1x16x16xf32>
    %cst_118 = arith.constant 1.000000e+00 : f32
    %334 = vector.broadcast %cst_118 : f32 to vector<1x16x16xf32>
    %335 = arith.subf %334, %332 : vector<1x16x16xf32>
    %336 = arith.mulf %335, %314 : vector<1x16x16xf32>
    %337 = arith.addf %333, %336 : vector<1x16x16xf32>
    %338 = arith.subf %282, %102 : vector<1x16x16xf32>
    %339 = math.absf %338 : vector<1x16x16xf32>
    %cst_119 = arith.constant 1.57079637 : f32
    %340 = vector.broadcast %cst_119 : f32 to vector<1x16x16xf32>
    %341 = arith.subf %339, %340 : vector<1x16x16xf32>
    %342 = math.absf %341 : vector<1x16x16xf32>
    %cst_120 = arith.constant 0.636619746 : f32
    %343 = vector.broadcast %cst_120 : f32 to vector<1x16x16xf32>
    %344 = arith.mulf %342, %343 : vector<1x16x16xf32>
    %cst_121 = arith.constant 5.000000e-01 : f32
    %345 = vector.broadcast %cst_121 : f32 to vector<1x16x16xf32>
    %346 = arith.subf %306, %345 : vector<1x16x16xf32>
    %cst_122 = arith.constant -1.000000e+01 : f32
    %347 = vector.broadcast %cst_122 : f32 to vector<1x16x16xf32>
    %348 = arith.mulf %347, %346 : vector<1x16x16xf32>
    %349 = math.exp %348 : vector<1x16x16xf32>
    %cst_123 = arith.constant 1.000000e+00 : f32
    %350 = vector.broadcast %cst_123 : f32 to vector<1x16x16xf32>
    %351 = arith.addf %350, %349 : vector<1x16x16xf32>
    %352 = tpu.reciprocal %351 : vector<1x16x16xf32> -> vector<1x16x16xf32>
    %cst_124 = arith.constant 7.500000e-01 : f32
    %353 = vector.broadcast %cst_124 : f32 to vector<1x16x16xf32>
    %354 = arith.subf %313, %353 : vector<1x16x16xf32>
    %cst_125 = arith.constant -2.000000e+01 : f32
    %355 = vector.broadcast %cst_125 : f32 to vector<1x16x16xf32>
    %356 = arith.mulf %355, %354 : vector<1x16x16xf32>
    %357 = math.exp %356 : vector<1x16x16xf32>
    %cst_126 = arith.constant 1.000000e+00 : f32
    %358 = vector.broadcast %cst_126 : f32 to vector<1x16x16xf32>
    %359 = arith.addf %358, %357 : vector<1x16x16xf32>
    %360 = tpu.reciprocal %359 : vector<1x16x16xf32> -> vector<1x16x16xf32>
    %361 = arith.mulf %352, %360 : vector<1x16x16xf32>
    %cst_127 = arith.constant 5.000000e-01 : f32
    %362 = vector.broadcast %cst_127 : f32 to vector<1x16x16xf32>
    %363 = arith.subf %337, %362 : vector<1x16x16xf32>
    %cst_128 = arith.constant -1.000000e+01 : f32
    %364 = vector.broadcast %cst_128 : f32 to vector<1x16x16xf32>
    %365 = arith.mulf %364, %363 : vector<1x16x16xf32>
    %366 = math.exp %365 : vector<1x16x16xf32>
    %cst_129 = arith.constant 1.000000e+00 : f32
    %367 = vector.broadcast %cst_129 : f32 to vector<1x16x16xf32>
    %368 = arith.addf %367, %366 : vector<1x16x16xf32>
    %369 = tpu.reciprocal %368 : vector<1x16x16xf32> -> vector<1x16x16xf32>
    %cst_130 = arith.constant 7.500000e-01 : f32
    %370 = vector.broadcast %cst_130 : f32 to vector<1x16x16xf32>
    %371 = arith.subf %344, %370 : vector<1x16x16xf32>
    %cst_131 = arith.constant -2.000000e+01 : f32
    %372 = vector.broadcast %cst_131 : f32 to vector<1x16x16xf32>
    %373 = arith.mulf %372, %371 : vector<1x16x16xf32>
    %374 = math.exp %373 : vector<1x16x16xf32>
    %cst_132 = arith.constant 1.000000e+00 : f32
    %375 = vector.broadcast %cst_132 : f32 to vector<1x16x16xf32>
    %376 = arith.addf %375, %374 : vector<1x16x16xf32>
    %377 = tpu.reciprocal %376 : vector<1x16x16xf32> -> vector<1x16x16xf32>
    %378 = arith.mulf %369, %377 : vector<1x16x16xf32>
    %379 = arith.mulf %361, %141 : vector<1x16x16xf32>
    %380 = arith.mulf %378, %231 : vector<1x16x16xf32>
    %381 = arith.addf %379, %380 : vector<1x16x16xf32>
    %382 = arith.addf %141, %231 : vector<1x16x16xf32>
    %383 = tpu.reciprocal %382 : vector<1x16x16xf32> -> vector<1x16x16xf32>
    %384 = arith.mulf %381, %383 : vector<1x16x16xf32>
    %385 = vector.shape_cast %384 : vector<1x16x16xf32> to vector<1x1x16x16xf32>
    %cst_133 = arith.constant dense<0.000000e+00> : vector<1xf32>
    %386 = vector.multi_reduction <add>, %385, %cst_133 [1, 2, 3] : vector<1x1x16x16xf32> to vector<1xf32>
    %387 = vector.shape_cast %386 : vector<1xf32> to vector<1x1x1x1xf32>
    %388 = vector.extract %387[0, 0, 0, 0] : f32 from vector<1x1x1x1xf32>
    %389 = arith.subf %2, %3 : vector<1x16x16xf32>
    %390 = arith.mulf %389, %389 : vector<1x16x16xf32>
    %391 = vector.shape_cast %390 : vector<1x16x16xf32> to vector<1x1x16x16xf32>
    %cst_134 = arith.constant dense<0.000000e+00> : vector<1xf32>
    %392 = vector.multi_reduction <add>, %391, %cst_134 [1, 2, 3] : vector<1x1x16x16xf32> to vector<1xf32>
    %393 = vector.shape_cast %392 : vector<1xf32> to vector<1x1x1x1xf32>
    %394 = vector.extract %393[0, 0, 0, 0] : f32 from vector<1x1x1x1xf32>
    %395 = vector.broadcast %388 : f32 to vector<1x8x128xf32>
    %c0_135 = arith.constant 0 : index
    %c0_136 = arith.constant 0 : index
    %c0_137 = arith.constant 0 : index
    %396 = vector.load %arg5[%c0_135, %c0_136, %c0_137] : memref<1x8x128xf32, #tpu.memory_space<vmem>>, vector<1x8x128xf32>
    tpu.vector_store %arg5[%c0_135, %c0_136, %c0_137], %395 {strides = array<i32>} : memref<1x8x128xf32, #tpu.memory_space<vmem>>, vector<1x8x128xf32>,
    %397 = vector.broadcast %394 : f32 to vector<1x8x128xf32>
    %c0_138 = arith.constant 0 : index
    %c0_139 = arith.constant 0 : index
    %c0_140 = arith.constant 0 : index
    %398 = vector.load %arg6[%c0_138, %c0_139, %c0_140] : memref<1x8x128xf32, #tpu.memory_space<vmem>>, vector<1x8x128xf32>
    tpu.vector_store %arg6[%c0_138, %c0_139, %c0_140], %397 {strides = array<i32>} : memref<1x8x128xf32, #tpu.memory_space<vmem>>, vector<1x8x128xf32>,
    return
  }
  func.func @transform_0(%arg0: i32) -> (i32, i32, i32) {
    %c0_i32 = arith.constant 0 : i32
    %c0_i32_0 = arith.constant 0 : i32
    %c0_i32_1 = arith.constant 0 : i32
    return %arg0, %c0_i32, %c0_i32_0 : i32, i32, i32
  }
  func.func @transform_1(%arg0: i32) -> (i32, i32, i32) {
    %c0_i32 = arith.constant 0 : i32
    %c0_i32_0 = arith.constant 0 : i32
    %c0_i32_1 = arith.constant 0 : i32
    return %arg0, %c0_i32, %c0_i32_0 : i32, i32, i32
  }
  func.func @transform_2(%arg0: i32) -> (i32, i32, i32) {
    %c0_i32 = arith.constant 0 : i32
    %c0_i32_0 = arith.constant 0 : i32
    %c0_i32_1 = arith.constant 0 : i32
    return %arg0, %c0_i32, %c0_i32_0 : i32, i32, i32
  }
  func.func @transform_3(%arg0: i32) -> (i32, i32, i32) {
    %c0_i32 = arith.constant 0 : i32
    %c0_i32_0 = arith.constant 0 : i32
    %c0_i32_1 = arith.constant 0 : i32
    return %arg0, %c0_i32, %c0_i32_0 : i32, i32, i32
  }
  func.func @transform_4(%arg0: i32) -> (i32, i32, i32) {
    %c0_i32 = arith.constant 0 : i32
    %c0_i32_0 = arith.constant 0 : i32
    %c0_i32_1 = arith.constant 0 : i32
    return %arg0, %c0_i32, %c0_i32_0 : i32, i32, i32
  }
  func.func @transform_5(%arg0: i32) -> (i32, i32, i32) {
    %c0_i32 = arith.constant 0 : i32
    %c0_i32_0 = arith.constant 0 : i32
    %c0_i32_1 = arith.constant 0 : i32
    return %arg0, %c0_i32, %c0_i32_0 : i32, i32, i32
  }
}

</mosaic_0001>

<bundles_post_ra>
// kernel: tpu_custom_call.1
= control target key start
LH: loop header
LB: loop body
LE: loop exit
PB: predicated region body
PF: predicated region fallthrough
CT: control target
= control target key end

     0   :  { %s2485_s0 = inlined_call_operand.hbm [shape: f32[2,16,16], index: 0, kind: input, shape index: {}]   ;;  %s2486_s1 = inlined_call_operand.hbm [shape: f32[2,16,16], index: 1, kind: input, shape index: {}]   ;;  %s2487_s2 = inlined_call_operand.hbm [shape: f32[2,16,16], index: 2, kind: input, shape index: {}]   ;;  %s2488_s3 = inlined_call_operand.hbm [shape: f32[2,16,16], index: 3, kind: input, shape index: {}]   ;;  %s2489_s4 = inlined_call_operand.hbm [shape: f32[2,8,128], index: 4, kind: output, shape index: {0}]   ;;  %s2490_s5 = inlined_call_operand.hbm [shape: f32[2,8,128], index: 5, kind: output, shape index: {1}]  }
   0x1   :  { %2498 = sst [smem:[#allocation20_spill]] %s2485_s0 }
   0x2   :  { %2499 = sst [smem:[#allocation21_spill]] %s2486_s1 }
   0x3   :  { %11 = vsyncpa [#allocation3], 0 }
   0x4   :  { %13 = vsyncpa [#allocation3 + $0x1], 0 }
   0x5   :  { %14 = vsyncpa [#allocation6], 0 }
   0x6   :  { %16 = vsyncpa [#allocation6 + $0x1], 0 }
   0x7   :  { %17 = vsyncpa [#allocation9], 0 }
   0x8   :  { %19 = vsyncpa [#allocation9 + $0x1], 0 }
   0x9   :  { %20 = vsyncpa [#allocation4], 0 }
   0xa   :  { %22 = vsyncpa [#allocation4 + $0x1], 0 }
   0xb   :  { %23 = vsyncpa [#allocation12], 0 }
   0xc   :  { %25 = vsyncpa [#allocation12 + $0x1], 0  ;;  %s1728_s18 = smov 0   ;;  %s1730_s19 = smov 0  }
   0xd   :  { %s1732_s20 = smov 0   ;;  %s1734_s21 = smov 0  }
   0xe LB: > { %2500 = sst [smem:[#allocation18_spill]] %s1681_s20  ;;  %s1749_s22 = sadd.s32 4294967295, %s1685_s21   ;;  %s1685_s21 = sphi %s1734_s21, %s2522_s21   ;;  %s1681_s20 = sphi %s1732_s20, %s2519_s20   ;;  %s1677_s19 = sphi %s1730_s19, %s2521_s19   ;;  %s1673_s18 = sphi %s1728_s18, %s2520_s18  }
   0xf   : > { %s1222_s23 = sadd.s32 4294967294, %s1685_s21   ;;  %s1753_s24 = sadd.s32 1, %s1685_s21  }
  0x10   : > { %s38_s25 = sadd.s32 1, %s1681_s20  ;;  %s35_s26 = ssub.s32 %s1685_s21, %s1753_s24 }
  0x11   : > { %p45_p0 = scmp.ne.s32.totalorder %s1681_s20, %s1677_s19  ;;  %p36_p1 = scmp.eq.s32.totalorder %s35_s26, 0 }
  0x12   : > { %p46_p2 = scmp.eq.s32.totalorder %s1685_s21, 0  ;;  %p51_p3 = scmp.ne.s32.totalorder %s1677_s19, %s1673_s18 }
  0x13   : > { %p52_p4 = scmp.eq.s32.totalorder %s1749_s22, 0  ;;  %p153_p7 = scmp.eq.s32.totalorder %s1749_s22, 1 }
  0x14   : > { %s1765_s27 = scalar_select %p36_p1, %s1681_s20, %s38_s25  }
  0x15   : > { %p47_p5 = por %p46_p2, %p45_p0  ;;  %p1767_p6 = por %p52_p4, %p51_p3 }
  0x16   : > { %2501 = sst [smem:[#allocation19_spill]] %s1765_s27  ;;  %p159_p8 = scmp.eq.s32.totalorder %s1222_s23, 1 }
  0x17   : > { %s2502_s28 = scalar_select %p1767_p6, 1, 0 }
  0x18   : > { %p1320_p10 = scmp.lt.s32.totalorder %s1685_s21, 2  ;;  %p1774_p11 = por %p153_p7, %p45_p0 }
  0x19   : > { %p1778_p12 = por %p159_p8, %p51_p3  ;;  %s1783_s6 = sand.u32 1, %s1681_s20  }
  0x1a   : > { %s2503_s29 = scalar_select %p1774_p11, 1, 0 }
  0x1b   : > { %s2504_s30 = scalar_select %p1778_p12, 1, 0 }
  0x1c   : > { %s1786_s7 = sshll.u32 %s1685_s21, 8  ;;  %s1789_s8 = sshll.u32 %s1783_s6, 4 }
  0x1d   : > { %p1791_p13 = pnand %p1320_p10, %p47_p5  ;;  %s226_s10 = sand.u32 1, %s1685_s21  }
  0x1e   : > { %s2506_s1 = sld [smem:[#allocation21_spill]]  ;;  %s230_s14 = scalar_lea.vmem [#allocation5], %s1789_s8 }
  0x1f   : > { %s237_s15 = sshll.u32 %s230_s14, 4  ;;  %s1806_s16 = scalar_lea.sflag [#allocation6], %s226_s10  ;;  %s1803_s15 = int_to_ptr.vmem [resolvable:$true] %s237_s15 }
  0x20   : > { %p1812_p2 = pneg %p1791_p13 }
  0x24   : > { %s1800_s13 = scalar_lea.hbm %s2506_s1, %s1786_s7  ;;  %s1464_s11 = scalar_lea.hbm %s2506_s1, 512 }
  0x25   : > { %s1459_s17 = scalar_lea.hbm %s1800_s13, 256  ;;  %p1465_p5 = scmp.lt.u32.totalorder %s1800_s13, %s2506_s1 }
  0x26   : > { %p1460_p1 = scmp.ne.s32.totalorder %s1800_s13, %s1459_s17  ;;  %p1466_p7 = scmp.lt.u32.totalorder %s1464_s11, %s1459_s17 }
  0x27   : > { %p1468_p10 = scmp.lt.u32.totalorder %s1459_s17, %s1800_s13 }
  0x28   : > { %p1462_p3 = pnand %p1812_p2, %p1460_p1  ;;  %p1467_p8 = por %p1466_p7, %p1465_p5 }
  0x2a   : > { %p1463_p4 = pneg %p1462_p3  ;;  %p1469_p9 = por %p1468_p10, %p1467_p8 }
  0x2c   : > { %p1470_p0 = pnand %p1469_p9, %p1463_p4 }
  0x2e   : > { %1473 = shalt.err (!%p1470_p0)
}
  0x2f   : > { %s1474_s10 = scalar_lea.vmem %s1803_s15, 256  ;;  %s1687_s25 = smov [#allocation5]  }
  0x30   : > { %p1475_p1 = scmp.ne.s32.totalorder %s1803_s15, %s1474_s10  ;;  %s1479_s26 = sshll.u32 %s1687_s25, 4  ;;  %s1480_s26 = int_to_ptr.vmem [resolvable:$false] %s1479_s26 }
  0x31   : > { %s1481_s12 = scalar_lea.vmem %s1480_s26, 512  ;;  %p1482_p11 = scmp.lt.s32.totalorder %s1803_s15, %s1480_s26 }
  0x32   : > { %p1477_p3 = pnand %p1475_p1, %p1812_p2  ;;  %p1483_p6 = scmp.lt.s32.totalorder %s1481_s12, %s1474_s10 }
  0x34   : > { %p1478_p12 = pneg %p1477_p3  ;;  %p1484_p5 = por %p1483_p6, %p1482_p11 }
  0x36   : > { %p1485_p7 = pnand %p1484_p5, %p1478_p12 }
  0x38   : > { %1488 = shalt.err (!%p1485_p7)
}
  0x39   : > { %s2493_s17 = smov 128   ;;  %s2495_s11 = smov 8  }
  0x3a   : > { %1306 = dma.hbm_to_vmem [thread:$0]  (!%p1791_p13), %s1800_s13, 256, %s1803_s15, %s1806_s16, %s2493_s17, %s2493_s17, %s2495_s11  }
  0x3b   : > { %p287_p6 = scmp.lt.s32.totalorder %s1685_s21, 3  ;;  %s2508_s0 = sld [smem:[#allocation20_spill]] }
  0x3c   : > { %p2509_p9 = scmp.ge.s32.totalorder %s1685_s21, 1  ;;  %s209_s12 = scalar_lea.vmem [#allocation2], %s1789_s8 }
  0x3d   : > { %s216_s1 = sshll.u32 %s209_s12, 4  ;;  %s206_s13 = scalar_lea.sflag [#allocation3], %s1783_s6  ;;  %s1853_s1 = int_to_ptr.vmem [resolvable:$true] %s216_s1 }
  0x3e   : > { %p1848_p11 = pnand %p2509_p9, %p287_p6 }
  0x40   : > { %s2510_s26 = scalar_select %p1848_p11, 1, 0 }
  0x41   : > { %s1844_s25 = scalar_lea.hbm %s2508_s0, %s1786_s7  ;;  %s1494_s17 = scalar_lea.hbm %s2508_s0, 512 }
  0x42   : > { %s1489_s15 = scalar_lea.hbm %s1844_s25, 256  ;;  %p1495_p8 = scmp.lt.u32.totalorder %s1844_s25, %s2508_s0 }
  0x43   : > { %p1490_p12 = scmp.ne.s32.totalorder %s1844_s25, %s1489_s15  ;;  %p1496_p10 = scmp.lt.u32.totalorder %s1494_s17, %s1489_s15 }
  0x44   : > { %p1498_p3 = scmp.lt.u32.totalorder %s1489_s15, %s1844_s25 }
  0x45   : > { %p1492_p0 = pnand %p1490_p12, %p1812_p2  ;;  %p1497_p1 = por %p1496_p10, %p1495_p8 }
  0x47   : > { %p1493_p4 = pneg %p1492_p0  ;;  %p1499_p5 = por %p1498_p3, %p1497_p1 }
  0x49   : > { %p1500_p7 = pnand %p1499_p5, %p1493_p4 }
  0x4b   : > { %1503 = shalt.err (!%p1500_p7)
}
  0x4c   : > { %s1504_s12 = scalar_lea.vmem %s1853_s1, 256  ;;  %s1690_s14 = smov [#allocation2]  }
  0x4d   : > { %p1505_p6 = scmp.ne.s32.totalorder %s1853_s1, %s1504_s12  ;;  %s1509_s10 = sshll.u32 %s1690_s14, 4  ;;  %s1510_s10 = int_to_ptr.vmem [resolvable:$false] %s1509_s10 }
  0x4e   : > { %s1511_s27 = scalar_lea.vmem %s1510_s10, 512  ;;  %p1512_p0 = scmp.lt.s32.totalorder %s1853_s1, %s1510_s10 }
  0x4f   : > { %p1507_p9 = pnand %p1505_p6, %p1812_p2  ;;  %p1513_p11 = scmp.lt.s32.totalorder %s1511_s27, %s1504_s12 }
  0x51   : > { %p1508_p12 = pneg %p1507_p9  ;;  %p1514_p8 = por %p1513_p11, %p1512_p0 }
  0x53   : > { %p1515_p10 = pnand %p1514_p8, %p1508_p12 }
  0x55   : > { %1518 = shalt.err (!%p1515_p10)
}
  0x56   : > { %s2511_s17 = smov 8   ;;  %s2512_s11 = smov 128  }
  0x57   : > { %1303 = dma.hbm_to_vmem [thread:$0]  (!%p1791_p13), %s1844_s25, 256, %s1853_s1, %s206_s13, %s2512_s11, %s2512_s11, %s2511_s17  }
  0x58   : > { %s1886_s12 = scalar_lea.hbm %s2487_s2, %s1786_s7  ;;  %s251_s10 = scalar_lea.vmem [#allocation7], %s1789_s8 }
  0x59   : > { %s258_s27 = sshll.u32 %s251_s10, 4  ;;  %s1519_s0 = scalar_lea.hbm %s1886_s12, 256  ;;  %s1889_s27 = int_to_ptr.vmem [resolvable:$true] %s258_s27 }
  0x5a   : > { %p1520_p11 = scmp.ne.s32.totalorder %s1886_s12, %s1519_s0  ;;  %s1524_s25 = scalar_lea.hbm %s2487_s2, 512 }
  0x5b   : > { %p1525_p3 = scmp.lt.u32.totalorder %s1886_s12, %s2487_s2  ;;  %p1526_p5 = scmp.lt.u32.totalorder %s1524_s25, %s1519_s0 }
  0x5c   : > { %p1522_p4 = pnand %p1520_p11, %p1812_p2  ;;  %p1528_p6 = scmp.lt.u32.totalorder %s1519_s0, %s1886_s12 }
  0x5d   : > { %p1527_p7 = por %p1526_p5, %p1525_p3 }
  0x5e   : > { %p1523_p1 = pneg %p1522_p4 }
  0x5f   : > { %p1529_p9 = por %p1528_p6, %p1527_p7 }
  0x61   : > { %p1530_p12 = pnand %p1529_p9, %p1523_p1 }
  0x63   : > { %1533 = shalt.err (!%p1530_p12)
}
  0x64   : > { %s1534_s14 = scalar_lea.vmem %s1889_s27, 256  ;;  %s1691_s20 = smov [#allocation7]  }
  0x65   : > { %p1535_p0 = scmp.ne.s32.totalorder %s1889_s27, %s1534_s14  ;;  %s1539_s10 = sshll.u32 %s1691_s20, 4  ;;  %s1540_s10 = int_to_ptr.vmem [resolvable:$false] %s1539_s10 }
  0x66   : > { %s1541_s1 = scalar_lea.vmem %s1540_s10, 512  ;;  %p1542_p11 = scmp.lt.s32.totalorder %s1889_s27, %s1540_s10 }
  0x67   : > { %p1537_p8 = pnand %p1535_p0, %p1812_p2  ;;  %p1543_p4 = scmp.lt.s32.totalorder %s1541_s1, %s1534_s14 }
  0x69   : > { %p1538_p10 = pneg %p1537_p8  ;;  %p1544_p3 = por %p1543_p4, %p1542_p11 }
  0x6b   : > { %p1545_p5 = pnand %p1544_p3, %p1538_p10 }
  0x6d   : > { %1548 = shalt.err (!%p1545_p5)
}
  0x6e   : > { %1309 = dma.hbm_to_vmem [thread:$0]  (!%p1791_p13), %s1886_s12, 256, %s1889_s27, %s1806_s16, %s2512_s11, %s2512_s11, %s2511_s17  }
  0x6f   : > { %s1920_s13 = scalar_lea.hbm %s2488_s3, %s1786_s7  ;;  %s272_s15 = scalar_lea.vmem [#allocation8], %s1789_s8 }
  0x70   : > { %s279_s14 = sshll.u32 %s272_s15, 4  ;;  %s269_s20 = scalar_lea.sflag [#allocation9], %s1783_s6  ;;  %s1923_s14 = int_to_ptr.vmem [resolvable:$true] %s279_s14 }
  0x71   : > { %s1549_s10 = scalar_lea.hbm %s1920_s13, 256  ;;  %s1554_s27 = scalar_lea.hbm %s2488_s3, 512 }
  0x72   : > { %p1550_p1 = scmp.ne.s32.totalorder %s1920_s13, %s1549_s10  ;;  %p1555_p9 = scmp.lt.u32.totalorder %s1920_s13, %s2488_s3 }
  0x73   : > { %p1556_p12 = scmp.lt.u32.totalorder %s1554_s27, %s1549_s10  ;;  %p1558_p8 = scmp.lt.u32.totalorder %s1549_s10, %s1920_s13 }
  0x74   : > { %p1552_p7 = pnand %p1550_p1, %p1812_p2 }
  0x75   : > { %p1557_p0 = por %p1556_p12, %p1555_p9 }
  0x76   : > { %p1553_p6 = pneg %p1552_p7 }
  0x77   : > { %p1559_p10 = por %p1558_p8, %p1557_p0 }
  0x79   : > { %p1560_p11 = pnand %p1559_p10, %p1553_p6 }
  0x7b   : > { %1563 = shalt.err (!%p1560_p11)
}
  0x7c   : > { %s1564_s8 = scalar_lea.vmem %s1923_s14, 256  ;;  %s1692_s0 = smov [#allocation8]  }
  0x7d   : > { %p1565_p4 = scmp.ne.s32.totalorder %s1923_s14, %s1564_s8  ;;  %s1569_s25 = sshll.u32 %s1692_s0, 4  ;;  %s1570_s25 = int_to_ptr.vmem [resolvable:$false] %s1569_s25 }
  0x7e   : > { %s1571_s15 = scalar_lea.vmem %s1570_s25, 512  ;;  %p1572_p1 = scmp.lt.s32.totalorder %s1923_s14, %s1570_s25 }
  0x7f   : > { %p1567_p3 = pnand %p1565_p4, %p1812_p2  ;;  %p1573_p7 = scmp.lt.s32.totalorder %s1571_s15, %s1564_s8 }
  0x81   : > { %p1568_p5 = pneg %p1567_p3  ;;  %p1574_p9 = por %p1573_p7, %p1572_p1 }
  0x83   : > { %p1575_p12 = pnand %p1574_p9, %p1568_p5 }
  0x85   : > { %1578 = shalt.err (!%p1575_p12)
}
  0x86   : > { %1312 = dma.hbm_to_vmem [thread:$0]  (!%p1791_p13), %s1920_s13, 256, %s1923_s14, %s269_s20, %s2512_s11, %s2512_s11, %s2511_s17  }
  0x87   : > { %p2513_p2 = scmp.ne.s32.totalorder %s2510_s26, 0 }
  0x88   : > { %s1955_s23 = sand.u32 (!%p2513_p2), 1, %s1677_s19   ;;  %p2514_p6 = scmp.ne.s32.totalorder (!%p2513_p2), %s2502_s28, 0 }
  0x89   : > { %291 = sbr.rel (%p2513_p2) target bundleno = 686 (0x2ae), region = 36  ;;  %s1958_s10 = sshll.u32 (!%p2513_p2), %s1955_s23, 4 }
  0x8a   : > { %s294_s9 = scalar_lea.sflag (!%p2513_p2), [#allocation3], %s1955_s23  ;;  %s297_s16 = scalar_lea.vmem (!%p2513_p2), [#allocation2], %s1958_s10 }
  0x90   : > { %1652 = dma.done.wait (%p2514_p6), %s294_s9, 256  }
  0x91   : > { %1654 = vsyncadd (%p2514_p6), %s294_s9, 4294967040  ;;  %s302_s6 = sand.u32 1, %s1749_s22   ;;  %s306_s17 = scalar_lea.vmem [#allocation5], %s1958_s10 }
  0x92   : > { %s303_s26 = scalar_lea.sflag [#allocation6], %s302_s6 }
  0x93   : > { %1656 = dma.done.wait (%p2514_p6), %s303_s26, 512  }
  0x94   : > { %1658 = vsyncadd (%p2514_p6), %s303_s26, 4294966784  ;;  %s315_s11 = scalar_lea.vmem [#allocation7], %s1958_s10  ;;  %s321_s13 = scalar_lea.sflag [#allocation9], %s1955_s23 }
  0x95   : > { %s324_s14 = scalar_lea.vmem [#allocation8], %s1958_s10 }
  0x96   : > { %1660 = dma.done.wait (%p2514_p6), %s321_s13, 256  }
  0x97   : > { %1662 = vsyncadd (%p2514_p6), %s321_s13, 4294967040  ;;  %v372_v0 = vld [vmem:[%s297_s16 + $0x8] sm:$0xff]  ;;  %v371_v1 = vld [vmem:[%s297_s16] sm:$0xff]  ;;  %s1693_s20 = smov 1   ;;  %s1694_s28 = smov 127   ;;  %vm395_vm0 = vcmask 7168  }
  0x98   : > { %545 = vrot.lane.b32.xlu1 %v372_v0, %s1693_s20  ;;  %543 = vrot.lane.b32.xlu0 %v371_v1, %s1693_s20  ;;  %v1979_v2 = vld [vmem:[%s306_s17] sm:$0xff]  ;;  %v1985_v6 = vld [vmem:[%s306_s17 + $0x8] sm:$0xff]  ;;  %v562_v15 = vmul.f32 2.0, %v372_v0  ;;  %v561_v17 = vmul.f32 2.0, %v371_v1  ;;  %vm404_vm1 = vcmask 121856   ;;  %vm428_vm2 = vcmask 1046528  }
  0x99   : > { %v1981_v3 = vld [vmem:[%s315_s11] sm:$0xff]  ;;  %v1987_v7 = vld [vmem:[%s315_s11 + $0x8] sm:$0xff]  ;;  %vm417_vm3 = vcmask 1040384   ;;  %vm989_vm14 = vcmask 130048   ;;  %s1242_s12 = sshll.u32 %s1955_s23, 3  ;;  %s1276_s1 = sshll.u32 %s1749_s22, 7 }
  0x9a   : > { %v379_v4 = vmul.f32 %v1981_v3, %v371_v1  ;;  %v381_v5 = vsub.f32 1.0, %v1981_v3  ;;  %v382_v8 = vsub.f32 1.0, %v1987_v7  ;;  %v380_v10 = vmul.f32 %v1987_v7, %v372_v0  ;;  %s370_s27 = scalar_lea.vmem [#allocation11], %s1242_s12  ;;  %s363_s8 = scalar_lea.vmem [#allocation10], %s1242_s12 }
  0x9b   : > { %s1054_s7 = sshll.u32 %s370_s27, 4  ;;  %s1041_s0 = sshll.u32 %s363_s8, 4  ;;  %s2409_s7 = int_to_ptr.vmem [resolvable:$true] %s1054_s7  ;;  %s2416_s0 = int_to_ptr.vmem [resolvable:$true] %s1041_s0 }
  0x9c   : > { %v383_v9 = vmul.f32 %v381_v5, %v1979_v2  ;;  %553 = vrot.lane.b32.xlu1 %v372_v0, %s1694_s28  ;;  %551 = vrot.lane.b32.xlu0 %v371_v1, %s1694_s28  ;;  %v384_v11 = vmul.f32 %v382_v8, %v1985_v6  ;;  %v1695_v1 = vmov 0.0   ;;  %s2414_s10 = scalar_lea.hbm %s2489_s4, %s1276_s1  ;;  %s2421_s26 = scalar_lea.hbm %s2490_s5, %s1276_s1 }
  0x9d   : > { %s1023_s17 = scalar_lea.sflag [#allocation4], %s1955_s23  ;;  %s1579_s11 = scalar_lea.vmem %s2416_s0, 128 }
  0x9e   : > { %v385_v12 = vadd.f32 %v383_v9, %v379_v4  ;;  %v386_v13 = vadd.f32 %v384_v11, %v380_v10  ;;  %p1580_p13 = scmp.ne.s32.totalorder %s2416_s0, %s1579_s11  ;;  %p2515_p0 = scmp.ne.s32.totalorder %s2503_s29, 0 }
  0x9f   : > { %s1696_s13 = smov [#allocation10]  }
  0xa0   : > { %398 = vrot.lane.b32.xlu1 %v385_v12, %s1694_s28  ;;  %389 = vrot.lane.b32.xlu0 %v385_v12, %s1693_s20  ;;  %v409_v43 = vmul.f32 2.0, %v385_v12  ;;  %v410_v0 = vmul.f32 2.0, %v386_v13  ;;  %p1581_p8 = pnand %p1580_p13, %p2515_p0 }
  0xa2   : > { %p1582_p10 = pneg %p1581_p8 }
  0xa4   : > { %400 = vrot.lane.b32.xlu1 %v386_v13, %s1694_s28  ;;  %391 = vrot.lane.b32.xlu0 %v386_v13, %s1693_s20 }
  0xa8   : > { %691 = vrot.lane.b32.xlu1 %v1985_v6, %s1693_s20  ;;  %689 = vrot.lane.b32.xlu0 %v1979_v2, %s1693_s20 }
  0xac   : > { %699 = vrot.lane.b32.xlu1 %v1985_v6, %s1694_s28  ;;  %697 = vrot.lane.b32.xlu0 %v1979_v2, %s1694_s28 }
 0x10a   : > { %v546_v14 = vpop.permute.xlu1 %545  ;;  %v544_v16 = vpop.permute.xlu0 %543 }
 0x10b   : > { %v550_v18 = vsel %vm395_vm0, 0.0, %v546_v14  ;;  %v549_v19 = vsel %vm395_vm0, 0.0, %v544_v16 }
 0x10c   : > { %v564_v20 = vadd.f32 %v562_v15, %v550_v18  ;;  %v563_v21 = vadd.f32 %v561_v17, %v549_v19 }
 0x10e   : > { %v554_v22 = vpop.permute.xlu1 %553  ;;  %v552_v23 = vpop.permute.xlu0 %551 }
 0x10f   : > { %v558_v24 = vsel %vm404_vm1, %v554_v22, 0.0  ;;  %v557_v25 = vsel %vm404_vm1, %v552_v23, 0.0 }
 0x110   : > { %v560_v26 = vsub.f32 %v558_v24, %v550_v18  ;;  %v566_v27 = vadd.f32 %v564_v20, %v558_v24  ;;  %v559_v28 = vsub.f32 %v557_v25, %v549_v19  ;;  %v565_v29 = vadd.f32 %v563_v21, %v557_v25 }
 0x112   : > { %v570_v30 = vrot.slane %v560_v26, 7  ;;  %v576_v31 = vmul.f32 2.0, %v560_v26  ;;  %v580_v32 = vrot.slane %v560_v26, 1  ;;  %v590_v33 = vrot.slane %v566_v27, 1  ;;  %v399_v34 = vpop.permute.xlu1 %398  ;;  %v390_v35 = vpop.permute.xlu0 %389 }
 0x113   : > { %v596_v36 = vrot.slane %v566_v27, 7  ;;  %v569_v37 = vrot.slane %v559_v28, 7  ;;  %v575_v38 = vmul.f32 2.0, %v559_v28  ;;  %v579_v39 = vrot.slane %v559_v28, 1 }
 0x114   : > { %v594_v40 = vsel %vm428_vm2, %v590_v33, 0.0  ;;  %v589_v41 = vrot.slane %v565_v29, 1  ;;  %v595_v42 = vrot.slane %v565_v29, 7  ;;  %v584_v44 = vsel %vm428_vm2, %v580_v32, 0.0 }
 0x115   : > { %v571_v45 = vsel %vm417_vm3, %v569_v37, %v570_v30  ;;  %v574_v46 = vsel %vm417_vm3, 0.0, %v569_v37  ;;  %v405_v47 = vsel %vm404_vm1, %v399_v34, 0.0  ;;  %v581_v52 = vsel %vm428_vm2, %v579_v39, %v580_v32 }
 0x116   : > { %v577_v48 = vadd.f32 %v575_v38, %v574_v46  ;;  %v578_v49 = vadd.f32 %v576_v31, %v571_v45  ;;  %v591_v50 = vsel %vm428_vm2, %v589_v41, %v590_v33  ;;  %v597_v51 = vsel %vm417_vm3, %v595_v42, %v596_v36  ;;  %v401_v56 = vpop.permute.xlu1 %400  ;;  %v392_v61 = vpop.permute.xlu0 %391 }
 0x117   : > { %v600_v53 = vsel %vm417_vm3, 0.0, %v595_v42  ;;  %v2010_v54 = vsub.f32 %v594_v40, %v597_v51  ;;  %v396_v55 = vsel %vm395_vm0, 0.0, %v390_v35  ;;  %v406_v63 = vsel %vm404_vm1, %v401_v56, 0.0 }
 0x118   : > { %v585_v57 = vadd.f32 %v581_v52, %v577_v48  ;;  %v586_v58 = vadd.f32 %v584_v44, %v578_v49  ;;  %v2013_v59 = vsub.f32 %v591_v50, %v600_v53  ;;  %v407_v60 = vsub.f32 %v405_v47, %v396_v55 }
 0x119   : > { %v411_v62 = vadd.f32 %v409_v43, %v396_v55  ;;  %v397_v8 = vsel %vm395_vm0, 0.0, %v392_v61  ;;  %v708_v42 = vmul.f32 2.0, %v1985_v6  ;;  %v606_v48 = vmul.f32 %v2010_v54, %v2010_v54 }
 0x11a   : > { %vm621_vm4 = vcmp.eq.f32.partialorder %v585_v57, 0.0  ;;  %vm622_vm5 = vcmp.eq.f32.partialorder %v586_v58, 0.0  ;;  %v418_v5 = vrot.slane %v407_v60, 7  ;;  %v424_v14 = vmul.f32 2.0, %v407_v60  ;;  %v692_v27 = vpop.permute.xlu1 %691  ;;  %v690_v43 = vpop.permute.xlu0 %689 }
 0x11b   : > { %v623_v4 = vsel %vm621_vm4, 1e-06, %v1695_v1  ;;  %v624_v9 = vsel %vm622_vm5, 1e-06, %v1695_v1  ;;  %v413_v11 = vadd.f32 %v411_v62, %v405_v47  ;;  %v408_v16 = vsub.f32 %v406_v63, %v397_v8 }
 0x11c   : > { %v625_v10 = vadd.f32 %v623_v4, %v585_v57  ;;  %v626_v12 = vadd.f32 %v624_v9, %v586_v58  ;;  %v423_v15 = vsel %vm417_vm3, 0.0, %v418_v5  ;;  %v429_v17 = vrot.slane %v407_v60, 1 }
 0x11d   : > { %v412_v13 = vadd.f32 %v410_v0, %v397_v8  ;;  %v445_v18 = vrot.slane %v413_v11, 7  ;;  %v419_v19 = vrot.slane %v408_v16, 7  ;;  %v425_v20 = vmul.f32 2.0, %v408_v16 }
 0x11e   : > { %1359 = vrcp.f32 %v625_v10  ;;  %v430_v21 = vrot.slane %v408_v16, 1  ;;  %v426_v22 = vadd.f32 %v424_v14, %v423_v15  ;;  %v439_v24 = vrot.slane %v413_v11, 1  ;;  %v700_v46 = vpop.permute.xlu1 %699  ;;  %v698_v0 = vpop.permute.xlu0 %697 }
 0x11f   : > { %1361 = vrcp.f32 %v626_v12  ;;  %v414_v23 = vadd.f32 %v412_v13, %v406_v63  ;;  %v420_v25 = vsel %vm417_vm3, %v418_v5, %v419_v19  ;;  %v450_v32 = vsel %vm417_vm3, 0.0, %v445_v18 }
 0x120   : > { %v431_v26 = vsel %vm428_vm2, %v429_v17, %v430_v21  ;;  %v427_v28 = vadd.f32 %v425_v20, %v420_v25  ;;  %v434_v33 = vsel %vm428_vm2, %v430_v21, 0.0  ;;  %v696_v45 = vsel %vm395_vm0, 0.0, %v692_v27 }
 0x121   : > { %v435_v29 = vadd.f32 %v431_v26, %v426_v22  ;;  %v440_v30 = vrot.slane %v414_v23, 1  ;;  %v446_v31 = vrot.slane %v414_v23, 7  ;;  %v707_v51 = vmul.f32 2.0, %v1979_v2 }
 0x122   : > { %v436_v34 = vadd.f32 %v434_v33, %v427_v28  ;;  %v603_v52 = vmul.f32 %v585_v57, %v585_v57  ;;  %v604_v53 = vmul.f32 %v586_v58, %v586_v58  ;;  %v710_v60 = vadd.f32 %v708_v42, %v696_v45 }
 0x123   : > { %v441_v35 = vsel %vm428_vm2, %v439_v24, %v440_v30  ;;  %v444_v36 = vsel %vm428_vm2, %v440_v30, 0.0  ;;  %v447_v37 = vsel %vm417_vm3, %v445_v18, %v446_v31  ;;  %v453_v40 = vadd.f32 1e-06, %v435_v29 }
 0x124   : > { %v2027_v38 = vsub.f32 %v441_v35, %v450_v32  ;;  %v2029_v39 = vsub.f32 %v444_v36, %v447_v37  ;;  %v454_v41 = vadd.f32 1e-06, %v436_v34  ;;  %v704_v61 = vsel %vm404_vm1, %v700_v46, 0.0 }
 0x125   : > { %vm475_vm6 = vcmp.eq.f32.partialorder %v453_v40, 0.0  ;;  %v455_v63 = vmul.f32 %v453_v40, %v453_v40  ;;  %v695_v58 = vsel %vm395_vm0, 0.0, %v690_v43  ;;  %v712_v8 = vadd.f32 %v710_v60, %v704_v61 }
 0x126   : > { %v477_v50 = vsel %vm475_vm6, 1e-06, %v1695_v1  ;;  %vm476_vm7 = vcmp.eq.f32.partialorder %v454_v41, 0.0  ;;  %v457_v2 = vmul.f32 %v2027_v38, %v2027_v38  ;;  %v706_v10 = vsub.f32 %v704_v61, %v696_v45 }
 0x127   : > { %v479_v55 = vadd.f32 %v477_v50, %v453_v40  ;;  %v478_v5 = vsel %vm476_vm7, 1e-06, %v1695_v1  ;;  %v456_v11 = vmul.f32 %v454_v41, %v454_v41  ;;  %v703_v14 = vsel %vm404_vm1, %v698_v0, 0.0 }
 0x128   : > { %v1360_v44 = vpop.eup %1359  ;;  %v2066_v12 = vadd.f32 %v457_v2, %v455_v63  ;;  %v480_v16 = vadd.f32 %v478_v5, %v454_v41  ;;  %v709_v17 = vadd.f32 %v707_v51, %v695_v58  ;;  %v2071_v13 = vadd.f32 %v606_v48, %v604_v53  ;;  %v378_v63 = vld [vmem:[%s324_s14 + $0x8] sm:$0xff] }
 0x129   : > { %v1362_v47 = vpop.eup %1361  ;;  %v2036_v49 = vmul.f32 %v1360_v44, %v2013_v59  ;;  %1363 = vrcp.f32 %v479_v55  ;;  %v458_v18 = vmul.f32 %v2029_v39, %v2029_v39  ;;  %v736_v19 = vrot.slane %v712_v8, 1  ;;  %v377_v44 = vld [vmem:[%s324_s14] sm:$0xff]  ;;  %s1583_s14 = sshll.u32 %s1696_s13, 4  ;;  %s1584_s14 = int_to_ptr.vmem [resolvable:$false] %s1583_s14 }
 0x12a   : > { %v2041_v6 = vmul.f32 %v1362_v47, %v2010_v54  ;;  %v605_v54 = vmul.f32 %v2013_v59, %v2013_v59  ;;  %v716_v20 = vrot.slane %v706_v10, 7  ;;  %v722_v21 = vmul.f32 2.0, %v706_v10  ;;  %s1585_s20 = scalar_lea.vmem %s1584_s14, 256  ;;  %p1586_p11 = scmp.lt.s32.totalorder %s2416_s0, %s1584_s14 }
 0x12b   : > { %v2044_v56 = vand.u32 2147483647, %v2036_v49  ;;  %v705_v22 = vsub.f32 %v703_v14, %v695_v58  ;;  %v711_v23 = vadd.f32 %v709_v17, %v703_v14  ;;  %v2075_v24 = vadd.f32 %v458_v18, %v456_v11  ;;  %p1587_p4 = scmp.lt.s32.totalorder %s1585_s20, %s1579_s11 }
 0x12c   : > { %v2048_v62 = vand.u32 2147483647, %v2041_v6  ;;  %v2069_v15 = vadd.f32 %v605_v54, %v603_v52  ;;  %vm461_vm10 = vcmp.gt.f32.partialorder %v2066_v12, 0.0  ;;  %v726_v25 = vrot.slane %v706_v10, 1 }
 0x12d   : > { %vm633_vm8 = vcmp.gt.f32.partialorder %v2044_v56, 2.4142137  ;;  %v645_v57 = vadd.f32 1.0, %v2044_v56  ;;  %v742_v26 = vrot.slane %v712_v8, 7  ;;  %vm635_vm11 = vcmp.gt.f32.partialorder %v2044_v56, 0.41421357  ;;  %p1588_p3 = por %p1587_p4, %p1586_p11 }
 0x12e   : > { %vm634_vm9 = vcmp.gt.f32.partialorder %v2048_v62, 2.4142137  ;;  %v637_v4 = vsel %vm633_vm8, %v2044_v56, 1.0  ;;  %v646_v9 = vadd.f32 1.0, %v2048_v62  ;;  %v715_v27 = vrot.slane %v705_v22, 7 }
 0x12f   : > { %v638_v59 = vsel %vm634_vm9, %v2048_v62, 1.0  ;;  %1365 = vrcp.f32 %v637_v4  ;;  %v721_v28 = vmul.f32 2.0, %v705_v22  ;;  %v1250_v30 = vadd.f32 -1.0, %v2044_v56  ;;  %p1589_p5 = pnand %p1588_p3, %p1582_p10 }
 0x130   : > { %1367 = vrcp.f32 %v638_v59  ;;  %v740_v31 = vsel %vm428_vm2, %v736_v19, 0.0  ;;  %v735_v32 = vrot.slane %v711_v23, 1  ;;  %v741_v33 = vrot.slane %v711_v23, 7 }
 0x131   : > { %1369 = vrcp.f32 %v645_v57  ;;  %v1251_v34 = vadd.f32 -1.0, %v2048_v62  ;;  %v717_v36 = vsel %vm417_vm3, %v715_v27, %v716_v20  ;;  %v720_v37 = vsel %vm417_vm3, 0.0, %v715_v27 }
 0x132   : > { %1371 = vrcp.f32 %v646_v9  ;;  %v723_v40 = vadd.f32 %v721_v28, %v720_v37  ;;  %v725_v41 = vrot.slane %v705_v22, 1  ;;  %v737_v42 = vsel %vm428_vm2, %v735_v32, %v736_v19 }
 0x133   : > { %1373 = vrcp.f32 %v480_v16  ;;  %v1364_v29 = vpop.eup %1363  ;;  %v743_v43 = vsel %vm417_vm3, %v741_v33, %v742_v26  ;;  %v724_v47 = vadd.f32 %v722_v21, %v717_v36  ;;  %vm462_vm12 = vcmp.gt.f32.partialorder %v2075_v24, 0.0 }
 0x134   : > { %v2083_v35 = vmul.f32 %v1364_v29, %v2027_v38  ;;  %v746_v38 = vsel %vm417_vm3, 0.0, %v741_v33  ;;  %v2095_v48 = vsub.f32 %v740_v31, %v743_v43  ;;  %v463_v51 = vsel %vm461_vm10, %v2066_v12, 1.0 }
 0x135   : > { %v730_v52 = vsel %vm428_vm2, %v726_v25, 0.0  ;;  %v2102_v53 = vsub.f32 %v737_v42, %v746_v38  ;;  %v1002_v2 = vsub.f32 %v1981_v3, %v377_v44  ;;  %v727_v4 = vsel %vm428_vm2, %v725_v41, %v726_v25 }
 0x136   : > { %v2092_v46 = vand.u32 2147483647, %v2083_v35  ;;  %v731_v8 = vadd.f32 %v727_v4, %v723_v40  ;;  %v732_v59 = vadd.f32 %v730_v52, %v724_v47  ;;  %vm636_vm15 = vcmp.gt.f32.partialorder %v2048_v62, 0.41421357 }
 0x137   : > { %v1003_v9 = vsub.f32 %v1987_v7, %v378_v63  ;;  %v464_v16 = vsel %vm462_vm12, %v2075_v24, 1.0  ;;  %v1004_v19 = vmul.f32 %v1002_v2, %v1002_v2  ;;  %v751_v36 = vmul.f32 %v2102_v53, %v2102_v53 }
 0x138   : > { %v499_v61 = vadd.f32 1.0, %v2092_v46  ;;  %vm487_vm13 = vcmp.gt.f32.partialorder %v2092_v46, 2.4142137  ;;  %vm489_vm0 = vcmp.gt.f32.partialorder %v2092_v46, 0.41421357  ;;  %vm767_vm1 = vcmp.eq.f32.partialorder %v731_v8, 0.0 }
 0x139   : > { %v1366_v45 = vpop.eup %1365  ;;  %v491_v0 = vsel %vm487_vm13, %v2092_v46, 1.0  ;;  %vm768_vm2 = vcmp.eq.f32.partialorder %v732_v59, 0.0  ;;  %v1244_v23 = vadd.f32 -1.0, %v2092_v46  ;;  %v1005_v25 = vmul.f32 %v1003_v9, %v1003_v9 }
 0x13a   : > { %v1368_v50 = vpop.eup %1367  ;;  %v640_v60 = vmul.f32 -1.0, %v1366_v45  ;;  %1375 = vrcp.f32 %v499_v61  ;;  %v769_v27 = vsel %vm767_vm1, 1e-06, %v1695_v1  ;;  %v770_v28 = vsel %vm768_vm2, 1e-06, %v1695_v1 }
 0x13b   : > { %v1370_v55 = vpop.eup %1369  ;;  %v642_v57 = vmul.f32 -1.0, %v1368_v50  ;;  %1377 = vrcp.f32 %v491_v0  ;;  %v771_v31 = vadd.f32 %v769_v27, %v731_v8  ;;  %v752_v40 = vmul.f32 %v2095_v48, %v2095_v48 }
 0x13c   : > { %v1372_v54 = vpop.eup %1371  ;;  %v648_v58 = vmul.f32 %v1370_v55, %v1250_v30  ;;  %1379 = vrsqrt.f32 %v463_v51  ;;  %v750_v30 = vmul.f32 %v732_v59, %v732_v59  ;;  %v772_v41 = vadd.f32 %v770_v28, %v732_v59 }
 0x13d   : > { %v650_v5 = vmul.f32 %v1372_v54, %v1251_v34  ;;  %v1374_v10 = vpop.eup %1373  ;;  %v1006_v45 = vsel %vm989_vm14, %v1004_v19, 0.0  ;;  %v1007_v51 = vsel %vm989_vm14, %v1005_v25, 0.0  ;;  %vm609_vm4 = vcmp.gt.f32.partialorder %v2069_v15, 0.0 }
 0x13e   : > { %v651_v3 = vsel %vm635_vm11, %v648_v58, %v2044_v56  ;;  %v2135_v18 = vmul.f32 %v1374_v10, %v2029_v39  ;;  %v749_v39 = vmul.f32 %v731_v8, %v731_v8  ;;  %v1008_v61 = vadd.f32 %v1007_v51, %v1006_v45 }
 0x13f   : > { %v652_v11 = vsel %vm636_vm15, %v650_v5, %v2048_v62  ;;  %v2123_v14 = vsel %vm633_vm8, %v640_v60, %v651_v3  ;;  %v2168_v54 = vadd.f32 %v752_v40, %v750_v30  ;;  %vm610_vm5 = vcmp.gt.f32.partialorder %v2071_v13, 0.0 }
 0x140   : > { %v2130_v17 = vsel %vm634_vm9, %v642_v57, %v652_v11  ;;  %v659_v7 = vmul.f32 %v2123_v14, %v2123_v14  ;;  %v2143_v22 = vand.u32 2147483647, %v2135_v18  ;;  %v2159_v44 = vadd.f32 %v751_v36, %v749_v39  ;;  %1009 = vadd.xlane.f32.xlu1 %v1008_v61 }
 0x141   : > { %v2139_v20 = vmul.f32 %v2130_v17, %v2130_v17  ;;  %v611_v5 = vsel %vm609_vm4, %v2069_v15, 1.0  ;;  %v612_v3 = vsel %vm610_vm5, %v2071_v13, 1.0  ;;  %vm756_vm7 = vcmp.gt.f32.partialorder %v2168_v54, 0.0 }
 0x142   : > { %v661_v21 = vmul.f32 0.080537446, %v659_v7  ;;  %vm488_vm3 = vcmp.gt.f32.partialorder %v2143_v22, 2.4142137  ;;  %v500_v34 = vadd.f32 1.0, %v2143_v22  ;;  %vm755_vm6 = vcmp.gt.f32.partialorder %v2159_v44, 0.0 }
 0x143   : > { %v662_v26 = vmul.f32 0.080537446, %v2139_v20  ;;  %v492_v33 = vsel %vm488_vm3, %v2143_v22, 1.0  ;;  %v757_v10 = vsel %vm755_vm6, %v2159_v44, 1.0  ;;  %v1245_v19 = vadd.f32 -1.0, %v2143_v22 }
 0x144   : > { %v1252_v29 = vadd.f32 -0.13877685, %v661_v21  ;;  %1381 = vrcp.f32 %v492_v33  ;;  %v1376_v42 = vpop.eup %1375  ;;  %vm490_vm1 = vcmp.gt.f32.partialorder %v2143_v22, 0.41421357  ;;  %v656_v30 = vsel %vm636_vm15, 0.7853982, %v1695_v1 }
 0x145   : > { %v1253_v32 = vadd.f32 -0.13877685, %v662_v26  ;;  %1383 = vrcp.f32 %v500_v34  ;;  %v1378_v47 = vpop.eup %1377  ;;  %v502_v50 = vmul.f32 %v1376_v42, %v1244_v23  ;;  %v509_v40 = vsel %vm489_vm0, 0.7853982, %v1695_v1 }
 0x146   : > { %v665_v37 = vmul.f32 %v1252_v29, %v659_v7  ;;  %1385 = vrcp.f32 %v771_v31  ;;  %v2163_v52 = vpop.eup %1379  ;;  %v494_v60 = vmul.f32 -1.0, %v1378_v47  ;;  %v658_v47 = vsel %vm634_vm9, 1.5707964, %v656_v30 }
 0x147   : > { %v666_v43 = vmul.f32 %v1253_v32, %v2139_v20  ;;  %1387 = vrcp.f32 %v772_v41  ;;  %v505_v2 = vsel %vm489_vm0, %v502_v50, %v2092_v46  ;;  %v467_v50 = vmul.f32 %v2163_v52, %v2066_v12 }
 0x148   : > { %v667_v38 = vadd.f32 0.19977711, %v665_v37  ;;  %1389 = vrsqrt.f32 %v464_v16  ;;  %v2174_v58 = vsel %vm487_vm13, %v494_v60, %v505_v2  ;;  %v655_v16 = vsel %vm635_vm11, 0.7853982, %v1695_v1 }
 0x149   : > { %v668_v55 = vadd.f32 0.19977711, %v666_v43  ;;  %v513_v4 = vmul.f32 %v2174_v58, %v2174_v58  ;;  %1391 = vrsqrt.f32 %v611_v5  ;;  %v657_v31 = vsel %vm633_vm8, 1.5707964, %v655_v16 }
 0x14a   : > { %v669_v63 = vmul.f32 %v667_v38, %v659_v7  ;;  %1393 = vrsqrt.f32 %v612_v3  ;;  %v511_v62 = vsel %vm487_vm13, 1.5707964, %v509_v40  ;;  %vm681_vm9 = vcmp.lt.f32.partialorder %v2036_v49, 0.0 }
 0x14b   : > { %v670_v57 = vmul.f32 %v668_v55, %v2139_v20  ;;  %v515_v59 = vmul.f32 0.080537446, %v513_v4  ;;  %1395 = vrsqrt.f32 %v757_v10  ;;  %vm535_vm13 = vcmp.lt.f32.partialorder %v2083_v35, 0.0 }
 0x14c   : > { %v1254_v0 = vadd.f32 -0.3333295, %v669_v63  ;;  %v469_v16 = vsel %vm461_vm10, %v467_v50, 0.0  ;;  %vm682_vm15 = vcmp.lt.f32.partialorder %v2041_v6, 0.0 }
 0x14d   : > { %v1255_v8 = vadd.f32 -0.3333295, %v670_v57  ;;  %v1246_v21 = vadd.f32 -0.13877685, %v515_v59 }
 0x14e   : > { %v673_v9 = vmul.f32 %v1254_v0, %v659_v7  ;;  %v1382_v11 = vpop.eup %1381  ;;  %v758_v7 = vsel %vm756_vm7, %v2168_v54, 1.0 }
 0x14f   : > { %v1384_v23 = vpop.eup %1383  ;;  %v496_v25 = vmul.f32 -1.0, %v1382_v11  ;;  %v674_v39 = vmul.f32 %v1255_v8, %v2139_v20  ;;  %v519_v28 = vmul.f32 %v1246_v21, %v513_v4  ;;  %1397 = vrsqrt.f32 %v758_v7 }
 0x150   : > { %v1386_v26 = vpop.eup %1385  ;;  %v504_v27 = vmul.f32 %v1384_v23, %v1245_v19  ;;  %v675_v32 = vmul.f32 %v673_v9, %v2123_v14 }
 0x151   : > { %v1388_v29 = vpop.eup %1387  ;;  %v2206_v33 = vmul.f32 %v1386_v26, %v2102_v53  ;;  %v521_v34 = vadd.f32 0.19977711, %v519_v28  ;;  %v510_v53 = vsel %vm490_vm1, 0.7853982, %v1695_v1 }
 0x152   : > { %v506_v20 = vsel %vm490_vm1, %v504_v27, %v2143_v22  ;;  %v2212_v36 = vmul.f32 %v1388_v29, %v2095_v48  ;;  %v2214_v37 = vpop.eup %1389  ;;  %v676_v48 = vmul.f32 %v674_v39, %v2130_v17  ;;  %v677_v38 = vadd.f32 %v675_v32, %v657_v31 }
 0x153   : > { %v2218_v56 = vsel %vm488_vm3, %v496_v25, %v506_v20  ;;  %v2227_v41 = vand.u32 2147483647, %v2206_v33  ;;  %v523_v43 = vmul.f32 %v521_v34, %v513_v4  ;;  %v468_v51 = vmul.f32 %v2214_v37, %v2075_v24  ;;  %v1392_v57 = vpop.eup %1391 }
 0x154   : > { %v2232_v42 = vmul.f32 %v2218_v56, %v2218_v56  ;;  %v2235_v45 = vand.u32 2147483647, %v2212_v36  ;;  %v2248_v61 = vsel %vm488_vm3, 1.5707964, %v510_v53  ;;  %v678_v0 = vadd.f32 %v676_v48, %v658_v47  ;;  %v1394_v22 = vpop.eup %1393 }
 0x155   : > { %vm779_vm8 = vcmp.gt.f32.partialorder %v2227_v41, 2.4142137  ;;  %v1248_v60 = vadd.f32 -0.3333295, %v523_v43  ;;  %v679_v59 = vadd.f32 %v677_v38, %v2123_v14  ;;  %v791_v46 = vadd.f32 1.0, %v2227_v41  ;;  %v1396_v9 = vpop.eup %1395 }
 0x156   : > { %v516_v55 = vmul.f32 0.080537446, %v2232_v42  ;;  %vm780_vm11 = vcmp.gt.f32.partialorder %v2235_v45, 2.4142137  ;;  %v783_v63 = vsel %vm779_vm8, %v2227_v41, 1.0  ;;  %v792_v3 = vadd.f32 1.0, %v2235_v45 }
 0x157   : > { %v784_v2 = vsel %vm780_vm11, %v2235_v45, 1.0  ;;  %v527_v8 = vmul.f32 %v1248_v60, %v513_v4  ;;  %1399 = vrcp.f32 %v783_v63  ;;  %v470_v4 = vsel %vm462_vm12, %v468_v51, 0.0 }
 0x158   : > { %v1247_v5 = vadd.f32 -0.13877685, %v516_v55  ;;  %1401 = vrcp.f32 %v784_v2  ;;  %v471_v14 = vsel %vm461_vm10, %v467_v50, 1e-06  ;;  %v2273_v19 = vsel %vm462_vm12, %v468_v51, 1e-06 }
 0x159   : > { %v529_v11 = vmul.f32 %v527_v8, %v2174_v58  ;;  %1403 = vrcp.f32 %v791_v46  ;;  %v615_v21 = vmul.f32 %v1392_v57, %v2069_v15  ;;  %v1398_v23 = vpop.eup %1397  ;;  %v616_v26 = vmul.f32 %v1394_v22, %v2071_v13 }
 0x15a   : > { %v520_v10 = vmul.f32 %v1247_v5, %v2232_v42  ;;  %1405 = vrcp.f32 %v792_v3  ;;  %v680_v39 = vadd.f32 %v678_v0, %v2130_v17  ;;  %v683_v27 = vsub.f32 0.0, %v679_v59 }
 0x15b   : > { %v531_v7 = vadd.f32 %v529_v11, %v511_v62  ;;  %v2280_v28 = vsel %vm609_vm4, %v615_v21, 1e-06  ;;  %v761_v29 = vmul.f32 %v1396_v9, %v2159_v44  ;;  %v619_v32 = vsel %vm609_vm4, %v1392_v57, 1000000.0 }
 0x15c   : > { %v522_v25 = vadd.f32 0.19977711, %v520_v10  ;;  %v620_v20 = vsel %vm610_vm5, %v1394_v22, 1000000.0  ;;  %v2291_v17 = vsel %vm610_vm5, %v616_v26, 1e-06  ;;  %v2297_v40 = vmul.f32 %v619_v32, %v469_v16 }
 0x15d   : > { %v533_v31 = vadd.f32 %v531_v7, %v2174_v58  ;;  %v765_v34 = vsel %vm755_vm6, %v1396_v9, 1000000.0  ;;  %v766_v53 = vsel %vm756_vm7, %v1398_v23, 1000000.0  ;;  %v762_v15 = vmul.f32 %v1398_v23, %v2168_v54 }
 0x15e   : > { %v524_v30 = vmul.f32 %v522_v25, %v2232_v42  ;;  %v2300_v43 = vmul.f32 %v620_v20, %v470_v4  ;;  %v685_v47 = vsel %vm681_vm9, %v683_v27, %v679_v59  ;;  %v2306_v13 = vsel %vm755_vm6, %v761_v29, 1e-06 }
 0x15f   : > { %v537_v58 = vsub.f32 0.0, %v533_v31  ;;  %v837_v38 = vsub.f32 %v2280_v28, %v471_v14  ;;  %v838_v50 = vsub.f32 %v2291_v17, %v2273_v19  ;;  %v2317_v49 = vmul.f32 %v765_v34, %v471_v14 }
 0x160   : > { %v1249_v48 = vadd.f32 -0.3333295, %v524_v30  ;;  %v2320_v44 = vmul.f32 %v766_v53, %v2273_v19  ;;  %v684_v63 = vsub.f32 0.0, %v680_v39  ;;  %v1257_v35 = vadd.f32 -1.0, %v2235_v45 }
 0x161   : > { %v1400_v51 = vpop.eup %1399  ;;  %v2315_v60 = vsel %vm535_vm13, %v537_v58, %v533_v31  ;;  %v2323_v57 = vmul.f32 -100000.0, %v837_v38  ;;  %v2325_v0 = vmul.f32 -100000.0, %v838_v50  ;;  %v2332_v8 = vsel %vm756_vm7, %v762_v15, 1e-06 }
 0x162   : > { %v528_v55 = vmul.f32 %v1249_v48, %v2232_v42  ;;  %v1402_v62 = vpop.eup %1401  ;;  %v869_v2 = vsub.f32 %v685_v47, %v2315_v60  ;;  %v1256_v42 = vadd.f32 -1.0, %v2227_v41  ;;  %v786_v59 = vmul.f32 -1.0, %v1400_v51 }
 0x163   : > { %v1404_v22 = vpop.eup %1403  ;;  %v841_v46 = vand.u32 2147483647, %v2323_v57  ;;  %v842_v3 = vand.u32 2147483647, %v2325_v0  ;;  %v883_v9 = vsub.f32 %v2306_v13, %v471_v14  ;;  %vm781_vm0 = vcmp.gt.f32.partialorder %v2227_v41, 0.41421357 }
 0x164   : > { %v530_v5 = vmul.f32 %v528_v55, %v2218_v56  ;;  %v1406_v10 = vpop.eup %1405  ;;  %v788_v16 = vmul.f32 -1.0, %v1402_v62  ;;  %v794_v4 = vmul.f32 %v1404_v22, %v1256_v42  ;;  %vm782_vm2 = vcmp.gt.f32.partialorder %v2235_v45, 0.41421357 }
 0x165   : > { %v796_v54 = vmul.f32 %v1406_v10, %v1257_v35  ;;  %v843_v21 = vsub.f32 0.0, %v841_v46  ;;  %v844_v23 = vsub.f32 0.0, %v842_v3  ;;  %v884_v14 = vsub.f32 %v2332_v8, %v2273_v19 }
 0x166   : > { %v532_v11 = vadd.f32 %v530_v5, %v2248_v61  ;;  %v797_v7 = vsel %vm781_vm0, %v794_v4, %v2227_v41  ;;  %v2346_v26 = vmul.f32 -100000.0, %v883_v9  ;;  %vm536_vm3 = vcmp.lt.f32.partialorder %v2135_v18, 0.0 }
 0x167   : > { %v798_v61 = vsel %vm782_vm2, %v796_v54, %v2235_v45  ;;  %v799_v27 = vsel %vm779_vm8, %v786_v59, %v797_v7  ;;  %v845_v29 = vmul.f32 1.442695, %v843_v21  ;;  %v847_v32 = vmul.f32 1.442695, %v844_v23 }
 0x168   : > { %v534_v25 = vadd.f32 %v532_v11, %v2218_v56  ;;  %v800_v30 = vsel %vm780_vm11, %v788_v16, %v798_v61  ;;  %v805_v31 = vmul.f32 %v799_v27, %v799_v27  ;;  %v686_v19 = vsel %vm682_vm15, %v684_v63, %v680_v39 }
 0x169   : > { %v806_v20 = vmul.f32 %v800_v30, %v800_v30  ;;  %1407 = vpow2.f32 %v845_v29  ;;  %v2358_v18 = vmul.f32 -100000.0, %v884_v14  ;;  %v887_v48 = vand.u32 2147483647, %v2346_v26 }
 0x16a   : > { %v538_v56 = vsub.f32 0.0, %v534_v25  ;;  %v807_v53 = vmul.f32 0.080537446, %v805_v31  ;;  %1409 = vpow2.f32 %v847_v32  ;;  %v871_v6 = vand.u32 2147483647, %v869_v2 }
 0x16b   : > { %v808_v15 = vmul.f32 0.080537446, %v806_v20  ;;  %v888_v47 = vand.u32 2147483647, %v2358_v18  ;;  %v889_v50 = vsub.f32 0.0, %v887_v48  ;;  %vm827_vm4 = vcmp.lt.f32.partialorder %v2206_v33, 0.0 }
 0x16c   : > { %v2360_v34 = vsel %vm536_vm3, %v538_v56, %v534_v25  ;;  %v1258_v38 = vadd.f32 -0.13877685, %v807_v53  ;;  %v1262_v59 = vadd.f32 -1.5707964, %v871_v6  ;;  %v801_v23 = vsel %vm781_vm0, 0.7853982, %v1695_v1 }
 0x16d   : > { %v870_v58 = vsub.f32 %v686_v19, %v2360_v34  ;;  %v1259_v51 = vadd.f32 -0.13877685, %v808_v15  ;;  %v890_v39 = vsub.f32 0.0, %v888_v47  ;;  %v891_v62 = vmul.f32 1.442695, %v889_v50 }
 0x16e   : > { %v811_v55 = vmul.f32 %v1258_v38, %v805_v31  ;;  %v875_v2 = vand.u32 2147483647, %v1262_v59  ;;  %v802_v7 = vsel %vm782_vm2, 0.7853982, %v1695_v1  ;;  %v803_v56 = vsel %vm779_vm8, 1.5707964, %v801_v23 }
 0x16f   : > { %v812_v63 = vmul.f32 %v1259_v51, %v806_v20  ;;  %v893_v5 = vmul.f32 1.442695, %v890_v39  ;;  %v872_v42 = vand.u32 2147483647, %v870_v58  ;;  %1411 = vpow2.f32 %v891_v62 }
 0x170   : > { %v813_v35 = vadd.f32 0.19977711, %v811_v55  ;;  %v877_v19 = vmul.f32 0.63661975, %v875_v2  ;;  %v804_v48 = vsel %vm780_vm11, 1.5707964, %v802_v7 }
 0x171   : > { %v814_v22 = vadd.f32 0.19977711, %v812_v63  ;;  %1413 = vpow2.f32 %v893_v5  ;;  %v1263_v11 = vadd.f32 -1.5707964, %v872_v42  ;;  %vm828_vm5 = vcmp.lt.f32.partialorder %v2212_v36, 0.0 }
 0x172   : > { %v815_v46 = vmul.f32 %v813_v35, %v805_v31  ;;  %v473_v62 = vsel %vm461_vm10, %v2163_v52, 1000000.0  ;;  %v474_v33 = vsel %vm462_vm12, %v2214_v37, 1000000.0  ;;  %vm849_vm6 = vcmp.ge.f32.partialorder %v2323_v57, 0.0 }
 0x173   : > { %v1408_v3 = vpop.eup %1407  ;;  %v816_v9 = vmul.f32 %v814_v22, %v806_v20  ;;  %v876_v61 = vand.u32 2147483647, %v1263_v11  ;;  %v835_v59 = vmul.f32 %v2280_v28, %v473_v62  ;;  %vm850_vm10 = vcmp.ge.f32.partialorder %v2325_v0, 0.0 }
 0x174   : > { %v1410_v10 = vpop.eup %1409  ;;  %v1260_v16 = vadd.f32 -0.3333295, %v815_v46  ;;  %v851_v4 = vadd.f32 1.0, %v1408_v3  ;;  %vm895_vm12 = vcmp.ge.f32.partialorder %v2346_v26, 0.0  ;;  %vm896_vm7 = vcmp.ge.f32.partialorder %v2358_v18, 0.0 }
 0x175   : > { %v1261_v54 = vadd.f32 -0.3333295, %v816_v9  ;;  %v852_v21 = vadd.f32 1.0, %v1410_v10  ;;  %v878_v38 = vmul.f32 0.63661975, %v876_v61 }
 0x176   : > { %v819_v25 = vmul.f32 %v1260_v16, %v805_v31  ;;  %1415 = vrcp.f32 %v851_v4 }
 0x177   : > { %v820_v14 = vmul.f32 %v1261_v54, %v806_v20  ;;  %1417 = vrcp.f32 %v852_v21  ;;  %v1268_v20 = vadd.f32 -0.75, %v877_v19  ;;  %v1269_v55 = vadd.f32 -0.75, %v878_v38 }
 0x178   : > { %v821_v29 = vmul.f32 %v819_v25, %v799_v27  ;;  %v882_v21 = vmul.f32 %v2332_v8, %v474_v33 }
 0x179   : > { %v822_v32 = vmul.f32 %v820_v14, %v800_v30  ;;  %v1412_v53 = vpop.eup %1411  ;;  %v939_v5 = vmul.f32 -20.0, %v1268_v20  ;;  %v940_v52 = vmul.f32 -20.0, %v1269_v55 }
 0x17a   : > { %v823_v58 = vadd.f32 %v821_v29, %v803_v56  ;;  %v897_v15 = vadd.f32 1.0, %v1412_v53 }
 0x17b   : > { %v824_v31 = vadd.f32 %v822_v32, %v804_v48  ;;  %v1414_v47 = vpop.eup %1413  ;;  %v941_v11 = vmul.f32 1.442695, %v939_v5  ;;  %v943_v23 = vmul.f32 1.442695, %v940_v52 }
 0x17c   : > { %v825_v50 = vadd.f32 %v823_v58, %v799_v27  ;;  %v898_v51 = vadd.f32 1.0, %v1414_v47  ;;  %1419 = vrcp.f32 %v897_v15 }
 0x17d   : > { %v826_v1 = vadd.f32 %v824_v31, %v800_v30 }
 0x17e   : > { %v829_v6 = vsub.f32 0.0, %v825_v50  ;;  %1421 = vrcp.f32 %v898_v51 }
 0x17f   : > { %v830_v41 = vsub.f32 0.0, %v826_v1  ;;  %1423 = vpow2.f32 %v941_v11 }
 0x180   : > { %v1416_v39 = vpop.eup %1415  ;;  %v831_v45 = vsel %vm827_vm4, %v829_v6, %v825_v50  ;;  %1425 = vpow2.f32 %v943_v23 }
 0x181   : > { %v1418_v63 = vpop.eup %1417  ;;  %v832_v27 = vsel %vm828_vm5, %v830_v41, %v826_v1  ;;  %v915_v30 = vsub.f32 %v831_v45, %v2315_v60  ;;  %v857_v42 = vmul.f32 %v1416_v39, %v1408_v3 }
 0x182   : > { %v916_v35 = vsub.f32 %v832_v27, %v2360_v34  ;;  %v858_v36 = vmul.f32 %v1418_v63, %v1410_v10  ;;  %v836_v34 = vmul.f32 %v2291_v17, %v474_v33  ;;  %v881_v10 = vmul.f32 %v2306_v13, %v473_v62 }
 0x183   : > { %v917_v22 = vand.u32 2147483647, %v915_v30  ;;  %v859_v12 = vsel %vm849_vm6, %v1416_v39, %v857_v42 }
 0x184   : > { %v918_v46 = vand.u32 2147483647, %v916_v35  ;;  %v860_v60 = vsel %vm850_vm10, %v1418_v63, %v858_v36  ;;  %v863_v9 = vsub.f32 1.0, %v859_v12  ;;  %v861_v37 = vmul.f32 %v859_v12, %v835_v59 }
 0x185   : > { %v1264_v3 = vadd.f32 -1.5707964, %v917_v22  ;;  %v864_v16 = vsub.f32 1.0, %v860_v60  ;;  %v862_v2 = vmul.f32 %v860_v60, %v836_v34 }
 0x186   : > { %v1265_v24 = vadd.f32 -1.5707964, %v918_v46  ;;  %v865_v57 = vmul.f32 %v863_v9, %v2297_v40  ;;  %v1420_v4 = vpop.eup %1419 }
 0x187   : > { %v921_v54 = vand.u32 2147483647, %v1264_v3  ;;  %v866_v0 = vmul.f32 %v864_v16, %v2300_v43  ;;  %v903_v14 = vmul.f32 %v1420_v4, %v1412_v53 }
 0x188   : > { %v922_v25 = vand.u32 2147483647, %v1265_v24  ;;  %v867_v7 = vadd.f32 %v865_v57, %v861_v37  ;;  %v1422_v61 = vpop.eup %1421 }
 0x189   : > { %v923_v29 = vmul.f32 0.63661975, %v921_v54  ;;  %v868_v56 = vadd.f32 %v866_v0, %v862_v2  ;;  %v904_v32 = vmul.f32 %v1422_v61, %v1414_v47  ;;  %v905_v19 = vsel %vm895_vm12, %v1420_v4, %v903_v14  ;;  %v1424_v30 = vpop.eup %1423 }
 0x18a   : > { %v924_v40 = vmul.f32 0.63661975, %v922_v25  ;;  %v1266_v48 = vadd.f32 -0.5, %v867_v7  ;;  %v909_v43 = vsub.f32 1.0, %v905_v19  ;;  %v907_v1 = vmul.f32 %v905_v19, %v881_v10  ;;  %v1426_v33 = vpop.eup %1425 }
 0x18b   : > { %v1272_v58 = vadd.f32 -0.75, %v923_v29  ;;  %v1267_v31 = vadd.f32 -0.5, %v868_v56  ;;  %v906_v38 = vsel %vm896_vm7, %v1422_v61, %v904_v32  ;;  %v945_v36 = vadd.f32 1.0, %v1424_v30 }
 0x18c   : > { %v1273_v15 = vadd.f32 -0.75, %v924_v40  ;;  %v927_v50 = vmul.f32 -10.0, %v1266_v48  ;;  %v910_v20 = vsub.f32 1.0, %v906_v38  ;;  %v911_v51 = vmul.f32 %v909_v43, %v2317_v49 }
 0x18d   : > { %v965_v53 = vmul.f32 -20.0, %v1272_v58  ;;  %v928_v26 = vmul.f32 -10.0, %v1267_v31  ;;  %v908_v39 = vmul.f32 %v906_v38, %v882_v21  ;;  %v946_v59 = vadd.f32 1.0, %v1426_v33 }
 0x18e   : > { %v966_v6 = vmul.f32 -20.0, %v1273_v15  ;;  %v929_v41 = vmul.f32 1.442695, %v927_v50  ;;  %v912_v55 = vmul.f32 %v910_v20, %v2320_v44  ;;  %v913_v45 = vadd.f32 %v911_v51, %v907_v1 }
 0x18f   : > { %v967_v47 = vmul.f32 1.442695, %v965_v53  ;;  %v931_v62 = vmul.f32 1.442695, %v928_v26  ;;  %v983_v10 = vadd.f32 %v2306_v13, %v2280_v28  ;;  %v984_v0 = vadd.f32 %v2332_v8, %v2291_v17 }
 0x190   : > { %v969_v18 = vmul.f32 1.442695, %v966_v6  ;;  %1427 = vpow2.f32 %v929_v41  ;;  %v914_v63 = vadd.f32 %v912_v55, %v908_v39  ;;  %v1270_v27 = vadd.f32 -0.5, %v913_v45 }
 0x191   : > { %1429 = vpow2.f32 %v967_v47 }
 0x192   : > { %1431 = vpow2.f32 %v969_v18  ;;  %v1271_v5 = vadd.f32 -0.5, %v914_v63  ;;  %v953_v42 = vmul.f32 -10.0, %v1270_v27 }
 0x193   : > { %1433 = vpow2.f32 %v931_v62 }
 0x194   : > { %v954_v49 = vmul.f32 -10.0, %v1271_v5  ;;  %v955_v35 = vmul.f32 1.442695, %v953_v42 }
 0x196   : > { %1435 = vpow2.f32 %v955_v35  ;;  %v957_v22 = vmul.f32 1.442695, %v954_v49 }
 0x198   : > { %1437 = vpow2.f32 %v957_v22 }
 0x199   : > { %1439 = vrcp.f32 %v945_v36 }
 0x19a   : > { %v1428_v44 = vpop.eup %1427 }
 0x19b   : > { %v1430_v12 = vpop.eup %1429  ;;  %v933_v52 = vadd.f32 1.0, %v1428_v44 }
 0x19c   : > { %v1432_v46 = vpop.eup %1431  ;;  %v971_v9 = vadd.f32 1.0, %v1430_v12 }
 0x19d   : > { %v1434_v60 = vpop.eup %1433  ;;  %1441 = vrcp.f32 %v933_v52  ;;  %v972_v11 = vadd.f32 1.0, %v1432_v46 }
 0x19e   : > { %v934_v3 = vadd.f32 1.0, %v1434_v60  ;;  %1443 = vrcp.f32 %v946_v59 }
 0x1a0   : > { %1445 = vrcp.f32 %v934_v3  ;;  %v1436_v34 = vpop.eup %1435 }
 0x1a1   : > { %1447 = vrcp.f32 %v971_v9  ;;  %v959_v16 = vadd.f32 1.0, %v1436_v34 }
 0x1a2   : > { %v1438_v24 = vpop.eup %1437  ;;  %1449 = vrcp.f32 %v972_v11 }
 0x1a3   : > { %v960_v37 = vadd.f32 1.0, %v1438_v24  ;;  %1451 = vrcp.f32 %v959_v16  ;;  %v1440_v57 = vpop.eup %1439 }
 0x1a5   : > { %1453 = vrcp.f32 %v960_v37 }
 0x1a6   : > { %1455 = vrcp.f32 %v983_v10 }
 0x1a7   : > { %v1442_v4 = vpop.eup %1441  ;;  %1457 = vrcp.f32 %v984_v0 }
 0x1a8   : > { %v1444_v54 = vpop.eup %1443  ;;  %v949_v2 = vmul.f32 %v1442_v4, %v1440_v57 }
 0x1aa   : > { %v1446_v21 = vpop.eup %1445  ;;  %v977_v40 = vmul.f32 %v949_v2, %v2280_v28 }
 0x1ab   : > { %v950_v23 = vmul.f32 %v1446_v21, %v1444_v54  ;;  %v1448_v25 = vpop.eup %1447 }
 0x1ac   : > { %v1450_v7 = vpop.eup %1449 }
 0x1ad   : > { %v1452_v14 = vpop.eup %1451  ;;  %v978_v19 = vmul.f32 %v950_v23, %v2291_v17 }
 0x1ae   : > { %v975_v61 = vmul.f32 %v1452_v14, %v1448_v25 }
 0x1af   : > { %v1454_v29 = vpop.eup %1453 }
 0x1b0   : > { %v976_v56 = vmul.f32 %v1454_v29, %v1450_v7  ;;  %v979_v32 = vmul.f32 %v975_v61, %v2306_v13  ;;  %v1456_v43 = vpop.eup %1455 }
 0x1b1   : > { %v1458_v38 = vpop.eup %1457 }
 0x1b2   : > { %v980_v48 = vmul.f32 %v976_v56, %v2332_v8  ;;  %v981_v58 = vadd.f32 %v979_v32, %v977_v40 }
 0x1b4   : > { %v982_v31 = vadd.f32 %v980_v48, %v978_v19  ;;  %v987_v15 = vmul.f32 %v1456_v43, %v981_v58 }
 0x1b6   : > { %v988_v50 = vmul.f32 %v1458_v38, %v982_v31  ;;  %v990_v53 = vsel %vm989_vm14, %v987_v15, 0.0 }
 0x1b8   : > { %v991_v1 = vsel %vm989_vm14, %v988_v50, 0.0 }
 0x1b9   : > { %v992_v20 = vadd.f32 %v991_v1, %v990_v53 }
 0x1bb   : > { %993 = vadd.xlane.f32.xlu0 %v992_v20 }
 0x1cd   : > { %v1010_v51 = vpop.xlane.xlu1 %1009 }
 0x1ce   : > { %v1011_v28 = vrot.slane %v1010_v51, 4 }
 0x1d0   : > { %v1012_v13 = vadd.f32 %v1011_v28, %v1010_v51 }
 0x1d2   : > { %v1013_v6 = vrot.slane %v1012_v13, 2 }
 0x1d4   : > { %v1014_v41 = vadd.f32 %v1013_v6, %v1012_v13 }
 0x1d6   : > { %v1015_v55 = vrot.slane %v1014_v41, 1 }
 0x1d8   : > { %v1016_v62 = vadd.f32 %v1015_v55, %v1014_v41 }
 0x248   : > { %v994_v17 = vpop.xlane.xlu0 %993 }
 0x249   : > { %v995_v8 = vrot.slane %v994_v17, 4 }
 0x24b   : > { %v996_v26 = vadd.f32 %v995_v8, %v994_v17 }
 0x24d   : > { %v997_v47 = vrot.slane %v996_v26, 2 }
 0x24f   : > { %v998_v39 = vadd.f32 %v997_v47, %v996_v26 }
 0x251   : > { %v999_v45 = vrot.slane %v998_v39, 1 }
 0x253   : > { %v1000_v18 = vadd.f32 %v999_v45, %v998_v39 }
 0x255   : > { %1284 = vpush %v1000_v18 }
 0x256   : > { %1286 = vpush %v1016_v62 }
 0x286   : > { %s1285_s9 = spop %1284 }
 0x287   : > { %v1018_v63 = vstv %s1285_s9  ;;  %s1287_s16 = spop %1286 }
 0x288   : > { %1019 = vst [vmem:[%s363_s8] sm:$0xff] %v1018_v63  ;;  %v1020_v27 = vstv %s1287_s16 }
 0x289   : > { %1021 = vst [vmem:[%s370_s27] sm:$0xff] %v1020_v27 }
 0x28a   : > { %1592 = shalt.err (!%p1589_p5)
}
 0x28b   : > { %s1593_s28 = scalar_lea.hbm %s2414_s10, 128  ;;  %s1597_s1 = scalar_lea.hbm %s2489_s4, 256 }
 0x28c   : > { %p1594_p1 = scmp.ne.s32.totalorder %s2414_s10, %s1593_s28  ;;  %p1598_p12 = scmp.lt.u32.totalorder %s2414_s10, %s2489_s4 }
 0x28d   : > { %p1599_p2 = scmp.lt.u32.totalorder %s1597_s1, %s1593_s28  ;;  %p1601_p13 = scmp.lt.u32.totalorder %s1593_s28, %s2414_s10 }
 0x28e   : > { %p1595_p7 = pnand %p1594_p1, %p2515_p0 }
 0x28f   : > { %p1600_p6 = por %p1599_p2, %p1598_p12 }
 0x290   : > { %p1596_p9 = pneg %p1595_p7 }
 0x291   : > { %p1602_p8 = por %p1601_p13, %p1600_p6 }
 0x293   : > { %p1603_p10 = pnand %p1602_p8, %p1596_p9 }
 0x295   : > { %1606 = shalt.err (!%p1603_p10)
}
 0x296   : > { %1296 = dma.vmem_to_hbm [thread:$0]  (%p2515_p0), %s2416_s0, 128, %s2414_s10, %s1023_s17  }
 0x297   : > { %s1028_s15 = scalar_lea.sflag [#allocation12], %s1955_s23  ;;  %s1607_s9 = scalar_lea.vmem %s2409_s7, 128 }
 0x298   : > { %p1608_p11 = scmp.ne.s32.totalorder %s2409_s7, %s1607_s9  ;;  %s1697_s16 = smov [#allocation11]  }
 0x299   : > { %s1611_s6 = sshll.u32 %s1697_s16, 4  ;;  %s1612_s6 = int_to_ptr.vmem [resolvable:$false] %s1611_s6 }
 0x29a   : > { %p1609_p4 = pnand %p1608_p11, %p2515_p0  ;;  %s1613_s22 = scalar_lea.vmem %s1612_s6, 256 }
 0x29b   : > { %p1614_p5 = scmp.lt.s32.totalorder %s2409_s7, %s1612_s6  ;;  %p1615_p1 = scmp.lt.s32.totalorder %s1613_s22, %s1607_s9 }
 0x29c   : > { %p1610_p3 = pneg %p1609_p4 }
 0x29d   : > { %p1616_p7 = por %p1615_p1, %p1614_p5 }
 0x29f   : > { %p1617_p9 = pnand %p1616_p7, %p1610_p3 }
 0x2a1   : > { %1620 = shalt.err (!%p1617_p9)
}
 0x2a2   : > { %s1621_s23 = scalar_lea.hbm %s2421_s26, 128  ;;  %s1625_s17 = scalar_lea.hbm %s2490_s5, 256 }
 0x2a3   : > { %p1622_p12 = scmp.ne.s32.totalorder %s2421_s26, %s1621_s23  ;;  %p1626_p13 = scmp.lt.u32.totalorder %s2421_s26, %s2490_s5 }
 0x2a4   : > { %p1627_p8 = scmp.lt.u32.totalorder %s1625_s17, %s1621_s23  ;;  %p1629_p11 = scmp.lt.u32.totalorder %s1621_s23, %s2421_s26 }
 0x2a5   : > { %p1623_p2 = pnand %p1622_p12, %p2515_p0 }
 0x2a6   : > { %p1628_p10 = por %p1627_p8, %p1626_p13 }
 0x2a7   : > { %p1624_p6 = pneg %p1623_p2 }
 0x2a8   : > { %p1630_p4 = por %p1629_p11, %p1628_p10 }
 0x2aa   : > { %p1631_p3 = pnand %p1630_p4, %p1624_p6 }
 0x2ac   : > { %1634 = shalt.err (!%p1631_p3)
}
 0x2ad   : > { %1297 = dma.vmem_to_hbm [thread:$0]  (%p2515_p0), %s2409_s7, 128, %s2421_s26, %s1028_s15  }
 0x2ae PF: > { %s1066_s14 = sand.u32 1, %s1673_s18   ;;  %p2516_p5 = scmp.ne.s32.totalorder %s2504_s30, 0 }
 0x2af   : > { %p2517_p1 = scmp.ge.s32.totalorder %s1685_s21, 2  ;;  %s1067_s20 = scalar_lea.sflag [#allocation4], %s1066_s14 }
 0x2b1   : > { %p1314_p7 = pnand %p2517_p1, %p2516_p5 }
 0x2b3   : > { %1664 = dma.done.wait (!%p1314_p7), %s1067_s20, 128  }
 0x2b4   : > { %1666 = vsyncadd (!%p1314_p7), %s1067_s20, 4294967168  ;;  %s1076_s28 = scalar_lea.sflag [#allocation12], %s1066_s14 }
 0x2b5   : > { %1668 = dma.done.wait (!%p1314_p7), %s1076_s28, 128  }
 0x2b6   : > { %1670 = vsyncadd (!%p1314_p7), %s1076_s28, 4294967168  ;;  %s2518_s29 = sld [smem:[#allocation18_spill]]  ;;  %s2519_s20 = sld [smem:[#allocation19_spill]] }
 0x2b7   : > { %p28_p0 = scmp.ge.s32.totalorder %s1753_s24, 4   ;;  %s2520_s18 = smov %s1677_s19 }
 0x2b8   : > { %s2522_s21 = smov %s1753_s24 }
 0x2b9   :  { %30 = sbr.rel (!%p28_p0) target bundleno = 14 (0xe), region = 135 }
 0x2bc   : > { %s2521_s19 = smov %s2518_s29 }
 0x2c0   :  { %1081 = vsyncpa [#allocation3], 1 }
 0x2c1   :  { %1083 = vsyncpa [#allocation3 + $0x1], 1 }
 0x2c2   :  { %1084 = vsyncpa [#allocation6], 1 }
 0x2c3   :  { %1086 = vsyncpa [#allocation6 + $0x1], 1 }
 0x2c4   :  { %1087 = vsyncpa [#allocation9], 1 }
 0x2c5   :  { %1089 = vsyncpa [#allocation9 + $0x1], 1 }
 0x2c6   :  { %1090 = vsyncpa [#allocation4], 1 }
 0x2c7   :  { %1092 = vsyncpa [#allocation4 + $0x1], 1 }
 0x2c8   :  { %1093 = vsyncpa [#allocation12], 1 }
 0x2c9   :  { %1095 = vsyncpa [#allocation12 + $0x1], 1 }

</bundles_post_ra>
